<compile_context>
chip_gen: v6e
topology: v6e:2x2x1
jax: 0.10.0
libtpu: 0.0.40
codegen_flags: <defaults>
</compile_context>

<pallas_src>
import functools

import jax
import jax.numpy as jnp
from jax import lax
from jax.experimental import pallas as pl
from jax.experimental.pallas import tpu as pltpu

EPS = 1e-5  # nn.LayerNorm default eps


def _layer_norm(x, gamma, beta):
    mean = jnp.mean(x, axis=-1, keepdims=True)
    var = jnp.mean((x - mean) ** 2, axis=-1, keepdims=True)
    return (x - mean) * lax.rsqrt(var + EPS) * gamma + beta


def encoder_layer_kernel(
    xq_ref, xkv_ref,
    wq_ref, wk_ref, wv_ref, bq_ref, bk_ref, bv_ref,
    wo_ref, bo_ref, ln1_g_ref, ln1_b_ref,
    w1_ref, b1_ref, w2_ref, b2_ref, ln2_g_ref, ln2_b_ref,
    out_ref,
    k_sc, v_sc,
    *, num_heads, dim_k, dim_v, n_kv, tkv, matmul_dtype, approx_recip):
    H, dk, dv = num_heads, dim_k, dim_v
    cd = matmul_dtype

    S = xkv_ref.shape[1]
    tq = xq_ref.shape[1]

    # ---- K/V projection: computed once per batch element and cached head-major
    #      in VMEM scratch; subsequent query tiles (i > 0) reuse the cache. ----
    @pl.when(pl.program_id(1) == 0)
    def _cache_kv():
        xkv = xkv_ref[0].astype(cd)                                        # (S, D)
        k = jnp.dot(xkv, wk_ref[...],
                    preferred_element_type=jnp.float32) + bk_ref[...]      # (S, H*dk)
        v = jnp.dot(xkv, wv_ref[...],
                    preferred_element_type=jnp.float32) + bv_ref[...]      # (S, H*dv)
        kh = jnp.transpose(k.reshape(S, H, dk), (1, 0, 2)).astype(cd)      # (H, S, dk)
        vh = jnp.transpose(v.reshape(S, H, dv), (1, 0, 2)).astype(cd)      # (H, S, dv)
        for j in range(n_kv):              # static; executed once per batch element
            k_sc[j] = kh[:, j * tkv:(j + 1) * tkv, :]
            v_sc[j] = vh[:, j * tkv:(j + 1) * tkv, :]

    # ---- Q projection for this query-row tile (one lane-dense MXU matmul) ----
    xq = xq_ref[0]                                                          # (tq, D)
    q = jnp.dot(xq.astype(cd), wq_ref[...],
                preferred_element_type=jnp.float32) + bq_ref[...]           # (tq, H*dk)
    inv_scale = jnp.float32(1.0 / (dk ** 0.5))
    qh = (jnp.transpose(q.reshape(tq, H, dk), (1, 0, 2)) * inv_scale).astype(cd)

    # ---- flash-style online softmax over cached K/V chunks ----
    def kv_step(j, carry):
        m_prev, l_prev, acc_prev = carry
        k_c = k_sc[j]                                                       # (H, tkv, dk)
        v_c = v_sc[j]                                                       # (H, tkv, dv)
        s = jnp.einsum('hqd,hkd->hqk', qh, k_c,
                       preferred_element_type=jnp.float32)                  # (H, tq, tkv)
        m_new = jnp.maximum(m_prev, jnp.max(s, axis=-1, keepdims=True))
        alpha = jnp.exp(m_prev - m_new)
        p = jnp.exp(s - m_new)
        l_new = alpha * l_prev + jnp.sum(p, axis=-1, keepdims=True)
        pv = jnp.einsum('hqk,hkd->hqd', p.astype(cd), v_c,
                        preferred_element_type=jnp.float32)                 # (H, tq, dv)
        acc_new = alpha * acc_prev + pv
        return m_new, l_new, acc_new

    m0 = jnp.full((H, tq, 1), -jnp.inf, jnp.float32)
    l0 = jnp.zeros((H, tq, 1), jnp.float32)
    acc0 = jnp.zeros((H, tq, dv), jnp.float32)
    _, l_f, acc_f = lax.fori_loop(0, n_kv, kv_step, (m0, l0, acc0),
                                  unroll=(n_kv <= 8))

    ctx = acc_f * pl.reciprocal(l_f, approx=approx_recip)                   # (H, tq, dv)

    # ---- output projection: per-head matmuls summed over heads (no ctx relayout) ----
    attn = jnp.einsum('hqd,hdm->hqm', ctx.astype(cd), wo_ref[...],
                      preferred_element_type=jnp.float32).sum(axis=0) + bo_ref[...]

    # Residual 1: LayerNorm(x + dropout(attn)); dropout == identity
    y1 = _layer_norm(xq + attn, ln1_g_ref[...], ln1_b_ref[...])

    # ---- feed forward: Linear -> ReLU -> Linear ----
    hid = jnp.maximum(jnp.dot(y1.astype(cd), w1_ref[...],
                              preferred_element_type=jnp.float32) + b1_ref[...], 0.0)
    ff = jnp.dot(hid.astype(cd), w2_ref[...],
                 preferred_element_type=jnp.float32) + b2_ref[...]

    # Residual 2
    out_ref[0] = _layer_norm(y1 + ff, ln2_g_ref[...], ln2_b_ref[...]).astype(out_ref.dtype)


def _vmem_limit_bytes():
    """Per-generation scoped-VMEM request, leaving headroom for compiler scratch."""
    try:
        cap = int(pltpu.get_tpu_info().vmem_capacity_bytes)
    except Exception:
        cap = 64 * 1024 * 1024
    # v7x (64 MiB) -> 48 MiB; v5e/v6e (128 MiB) -> 100 MiB
    return max(32 * 1024 * 1024, min(cap - 16 * 1024 * 1024, 100 * 1024 * 1024))


def transformer_encoder_layer(x, params, *, num_heads, dim_k, dim_v,
                              tq=None, tkv=None, matmul_dtype=jnp.float32,
                              approx_recip=None, single_buffer_weights=False):
    B, S, D = x.shape
    H, dk, dv = num_heads, dim_k, dim_v
    if tq is None:
        tq = min(S, 256)          # keep the 256-wide MXU M-dim busy on v6e/v7x
    assert S % tq == 0, "tq must divide S"
    n_q = S // tq
    if tkv is None:
        tkv = min(S, 512)         # bounds the live (H, tq, tkv) score block (v7x VMEM)
    assert S % tkv == 0, "tkv must divide S"
    n_kv = S // tkv
    if approx_recip is None:
        approx_recip = (matmul_dtype != jnp.float32)

    (wq, wk, wv, bq, bk, bv, wo, bo, ln1_g, ln1_b,
     w1, b1, w2, b2, ln2_g, ln2_b) = params

    # Pre-cast matmul weights once (outside the kernel); Wo reshaped head-major.
    cd = matmul_dtype
    wo3 = wo.reshape(H, dv, D)
    prepped = [wq.astype(cd), wk.astype(cd), wv.astype(cd), bq, bk, bv,
               wo3.astype(cd), bo, ln1_g, ln1_b,
               w1.astype(cd), b1, w2.astype(cd), b2, ln2_g, ln2_b]

    def full_spec(a):
        imap = lambda b, i, _nd=a.ndim: (0,) * _nd
        if single_buffer_weights:
            # v7x: constant-index blocks don't need double-buffering (halves weight VMEM)
            return pl.BlockSpec(a.shape, imap, pipeline_mode=pl.Buffered(1))
        return pl.BlockSpec(a.shape, imap)

    in_specs = (
        [pl.BlockSpec((1, tq, D), lambda b, i: (b, i, 0)),   # query-row tile
         pl.BlockSpec((1, S, D), lambda b, i: (b, 0, 0))]    # full sequence for K/V
        + [full_spec(p) for p in prepped])

    # ---- advisory cost estimate (params counted once; K/V proj once per b) ----
    Hdk, Hdv = H * dk, H * dv
    dff = w1.shape[1]
    flops = (
        2 * B * S * D * Hdk                  # Q projection
        + 2 * B * S * D * (Hdk + Hdv)        # K/V projections (cached per batch element)
        + 2 * B * H * S * S * dk             # scores
        + 2 * B * H * S * S * dv             # P @ V
        + 2 * B * S * Hdv * D                # output projection
        + 4 * B * S * D * dff)               # FFN
    transcendentals = B * H * S * S + 2 * B * S
    x_bytes = int(x.size) * x.dtype.itemsize
    param_bytes = sum(int(p.size) * p.dtype.itemsize for p in prepped)
    bytes_accessed = 3 * x_bytes + param_bytes

    kernel = functools.partial(
        encoder_layer_kernel, num_heads=H, dim_k=dk, dim_v=dv,
        n_kv=n_kv, tkv=tkv, matmul_dtype=cd, approx_recip=approx_recip)

    return pl.pallas_call(
        kernel,
        out_shape=jax.ShapeDtypeStruct((B, S, D), x.dtype),
        grid=(B, n_q),
        in_specs=in_specs,
        out_specs=pl.BlockSpec((1, tq, D), lambda b, i: (b, i, 0)),
        scratch_shapes=[pltpu.VMEM((n_kv, H, tkv, dk), cd),    # cached K (head-major)
                        pltpu.VMEM((n_kv, H, tkv, dv), cd)],   # cached V (head-major)
        compiler_params=pltpu.CompilerParams(
            # inner axis must be sequential: the K/V scratch carries across query tiles
            dimension_semantics=("parallel", "arbitrary"),
            vmem_limit_bytes=_vmem_limit_bytes()),
        cost_estimate=pl.CostEstimate(
            flops=int(flops),
            transcendentals=int(transcendentals),
            bytes_accessed=int(bytes_accessed)),
    )(x, x, *prepped)


def init_params(key, D, H, dk, dv, dff):
    ks = jax.random.split(key, 12)
    init = lambda k, shape: jax.random.normal(k, shape, jnp.float32) * 0.05
    # per-head weights (PyTorch ModuleList equivalent)
    wq_h = init(ks[0], (H, D, dk)); bq_h = init(ks[1], (H, dk))
    wk_h = init(ks[2], (H, D, dk)); bk_h = init(ks[3], (H, dk))
    wv_h = init(ks[4], (H, D, dv)); bv_h = init(ks[5], (H, dv))
    wo = init(ks[6], (H * dv, D)); bo = init(ks[7], (1, D))
    ln1_g = jnp.ones((1, D), jnp.float32); ln1_b = jnp.zeros((1, D), jnp.float32)
    w1 = init(ks[8], (D, dff)); b1 = init(ks[9], (1, dff))
    w2 = init(ks[10], (dff, D)); b2 = init(ks[11], (1, D))
    ln2_g = jnp.ones((1, D), jnp.float32); ln2_b = jnp.zeros((1, D), jnp.float32)

    # head-fused layouts for the kernel: head h occupies columns [h*dk, (h+1)*dk)
    wq = jnp.transpose(wq_h, (1, 0, 2)).reshape(D, H * dk)
    wk = jnp.transpose(wk_h, (1, 0, 2)).reshape(D, H * dk)
    wv = jnp.transpose(wv_h, (1, 0, 2)).reshape(D, H * dv)
    bq = bq_h.reshape(1, H * dk)
    bk = bk_h.reshape(1, H * dk)
    bv = bv_h.reshape(1, H * dv)

    fused = [wq, wk, wv, bq, bk, bv, wo, bo, ln1_g, ln1_b,
             w1, b1, w2, b2, ln2_g, ln2_b]
    per_head = (wq_h, bq_h, wk_h, bk_h, wv_h, bv_h)
    return fused, per_head


def reference(x, per_head, fused, H, dk):
    """Pure-JAX mirror of the PyTorch module (per-head loop), for verification."""
    wq_h, bq_h, wk_h, bk_h, wv_h, bv_h = per_head
    wo, bo, ln1_g, ln1_b, w1, b1, w2, b2, ln2_g, ln2_b = fused[6:]

    def ln(a, g, b_):
        m = jnp.mean(a, axis=-1, keepdims=True)
        v = jnp.mean((a - m) ** 2, axis=-1, keepdims=True)
        return (a - m) / jnp.sqrt(v + EPS) * g + b_

    heads = []
    for h in range(H):
        q = x @ wq_h[h] + bq_h[h]
        k = x @ wk_h[h] + bk_h[h]
        v = x @ wv_h[h] + bv_h[h]
        s = jnp.einsum('bsd,btd->bst', q, k) / (dk ** 0.5)
        p = jax.nn.softmax(s, axis=-1)
        heads.append(jnp.einsum('bst,btd->bsd', p, v))
    attn = jnp.concatenate(heads, -1) @ wo + bo
    y1 = ln(x + attn, ln1_g, ln1_b)
    ff = jnp.maximum(y1 @ w1 + b1, 0.0) @ w2 + b2
    return ln(y1 + ff, ln2_g, ln2_b)


if __name__ == "__main__":
    # small shapes consistent with the module (dim_model divisible by num_heads)
    B, S, D = 2, 16, 16
    H = 4
    dk = dv = D // H          # per-head dims (dim_model // num_heads)
    dff = 64                  # feed-forward hidden dim (scaled down from 2048)
    tq = 8                    # query-row tile -> grid (B, S//tq) = (2, 2)

    key = jax.random.PRNGKey(0)
    kx, kp = jax.random.split(key)
    x = jax.random.normal(kx, (B, S, D), jnp.float32)
    fused, per_head = init_params(kp, D, H, dk, dv, dff)

    ref = reference(x, per_head, fused, H, dk)

    # f32 matmul inputs, single KV chunk (tight correctness check)
    out = transformer_encoder_layer(x, fused, num_heads=H, dim_k=dk, dim_v=dv, tq=tq)
    out = jax.block_until_ready(out)
    assert out.shape == (B, S, D)
    assert jnp.allclose(out, ref, atol=2e-3, rtol=2e-3), \
        float(jnp.max(jnp.abs(out - ref)))

    # f32, chunked online-softmax path (tkv < S) exercises the flash-style loop
    out_chunked = transformer_encoder_layer(x, fused, num_heads=H, dim_k=dk, dim_v=dv,
                                            tq=tq, tkv=8)
    out_chunked = jax.block_until_ready(out_chunked)
    assert jnp.allclose(out_chunked, ref, atol=2e-3, rtol=2e-3), \
        float(jnp.max(jnp.abs(out_chunked - ref)))

    # bf16 matmul inputs / f32 accumulation (production setting for v5e/v6e/v7x)
    out_bf16 = transformer_encoder_layer(x, fused, num_heads=H, dim_k=dk, dim_v=dv,
                                         tq=tq, matmul_dtype=jnp.bfloat16)
    out_bf16 = jax.block_until_ready(out_bf16)
    assert out_bf16.shape == (B, S, D)
    assert jnp.allclose(out_bf16, ref, atol=1e-1, rtol=1e-1)

    print("KERNEL_OK")
</pallas_src>

<mosaic_0001>
module attributes {stable_mosaic.version = 11 : i64} {
  func.func @encoder_layer_kernel(%arg0: i32, %arg1: i32, %arg2: memref<1x8x16xf32, #tpu.memory_space<vmem>>, %arg3: memref<1x16x16xf32, #tpu.memory_space<vmem>>, %arg4: memref<16x16xf32, #tpu.memory_space<vmem>>, %arg5: memref<16x16xf32, #tpu.memory_space<vmem>>, %arg6: memref<16x16xf32, #tpu.memory_space<vmem>>, %arg7: memref<1x16xf32, #tpu.memory_space<vmem>>, %arg8: memref<1x16xf32, #tpu.memory_space<vmem>>, %arg9: memref<1x16xf32, #tpu.memory_space<vmem>>, %arg10: memref<4x4x16xf32, #tpu.memory_space<vmem>>, %arg11: memref<1x16xf32, #tpu.memory_space<vmem>>, %arg12: memref<1x16xf32, #tpu.memory_space<vmem>>, %arg13: memref<1x16xf32, #tpu.memory_space<vmem>>, %arg14: memref<16x64xf32, #tpu.memory_space<vmem>>, %arg15: memref<1x64xf32, #tpu.memory_space<vmem>>, %arg16: memref<64x16xf32, #tpu.memory_space<vmem>>, %arg17: memref<1x16xf32, #tpu.memory_space<vmem>>, %arg18: memref<1x16xf32, #tpu.memory_space<vmem>>, %arg19: memref<1x16xf32, #tpu.memory_space<vmem>>, %arg20: memref<1x8x16xf32, #tpu.memory_space<vmem>>, %arg21: memref<1x4x16x4xf32, #tpu.memory_space<vmem>>, %arg22: memref<1x4x16x4xf32, #tpu.memory_space<vmem>>) attributes {dimension_semantics = [#tpu.dimension_semantics<parallel>, #tpu.dimension_semantics<arbitrary>], iteration_bounds = array<i64: 2, 2>, scalar_prefetch = 0 : i64, scratch_operands = 2 : i64, tpu.core_type = #tpu.core_type<tc>, window_params = [{transform_indices = @transform_0, window_bounds = array<i64: 1, 8, 16>}, {transform_indices = @transform_1, window_bounds = array<i64: 1, 16, 16>}, {pipeline_mode = #tpu.pipeline_mode<synchronous>, transform_indices = @transform_2, window_bounds = array<i64: 16, 16>}, {pipeline_mode = #tpu.pipeline_mode<synchronous>, transform_indices = @transform_3, window_bounds = array<i64: 16, 16>}, {pipeline_mode = #tpu.pipeline_mode<synchronous>, transform_indices = @transform_4, window_bounds = array<i64: 16, 16>}, {pipeline_mode = #tpu.pipeline_mode<synchronous>, transform_indices = @transform_5, window_bounds = array<i64: 1, 16>}, {pipeline_mode = #tpu.pipeline_mode<synchronous>, transform_indices = @transform_6, window_bounds = array<i64: 1, 16>}, {pipeline_mode = #tpu.pipeline_mode<synchronous>, transform_indices = @transform_7, window_bounds = array<i64: 1, 16>}, {pipeline_mode = #tpu.pipeline_mode<synchronous>, transform_indices = @transform_8, window_bounds = array<i64: 4, 4, 16>}, {pipeline_mode = #tpu.pipeline_mode<synchronous>, transform_indices = @transform_9, window_bounds = array<i64: 1, 16>}, {pipeline_mode = #tpu.pipeline_mode<synchronous>, transform_indices = @transform_10, window_bounds = array<i64: 1, 16>}, {pipeline_mode = #tpu.pipeline_mode<synchronous>, transform_indices = @transform_11, window_bounds = array<i64: 1, 16>}, {pipeline_mode = #tpu.pipeline_mode<synchronous>, transform_indices = @transform_12, window_bounds = array<i64: 16, 64>}, {pipeline_mode = #tpu.pipeline_mode<synchronous>, transform_indices = @transform_13, window_bounds = array<i64: 1, 64>}, {pipeline_mode = #tpu.pipeline_mode<synchronous>, transform_indices = @transform_14, window_bounds = array<i64: 64, 16>}, {pipeline_mode = #tpu.pipeline_mode<synchronous>, transform_indices = @transform_15, window_bounds = array<i64: 1, 16>}, {pipeline_mode = #tpu.pipeline_mode<synchronous>, transform_indices = @transform_16, window_bounds = array<i64: 1, 16>}, {pipeline_mode = #tpu.pipeline_mode<synchronous>, transform_indices = @transform_17, window_bounds = array<i64: 1, 16>}, {transform_indices = @transform_18, window_bounds = array<i64: 1, 8, 16>}]} {
    %c0_i32 = arith.constant 0 : i32
    %0 = arith.cmpi eq, %arg1, %c0_i32 : i32
    %1 = arith.extui %0 : i1 to i32
    %c0_i32_0 = arith.constant 0 : i32
    %2 = arith.cmpi ne, %1, %c0_i32_0 : i32
    scf.if %2 {
      %c0_61 = arith.constant 0 : index
      %c0_62 = arith.constant 0 : index
      %c0_63 = arith.constant 0 : index
      %114 = vector.load %arg3[%c0_61, %c0_62, %c0_63] : memref<1x16x16xf32, #tpu.memory_space<vmem>>, vector<1x16x16xf32>
      %115 = vector.shape_cast %114 : vector<1x16x16xf32> to vector<16x16xf32>
      %c0_64 = arith.constant 0 : index
      %c0_65 = arith.constant 0 : index
      %116 = vector.load %arg5[%c0_64, %c0_65] : memref<16x16xf32, #tpu.memory_space<vmem>>, vector<16x16xf32>
      %cst_66 = arith.constant dense<0.000000e+00> : vector<16x16xf32>
      %117 = tpu.matmul %115, %116, %cst_66 {dimension_numbers = #tpu.dot_dimension_numbers<[1], [0], [0], [1], [0, 0, 1, 1], [], []>} : vector<16x16xf32>, vector<16x16xf32>, vector<16x16xf32> -> vector<16x16xf32>
      %c0_67 = arith.constant 0 : index
      %c0_68 = arith.constant 0 : index
      %118 = vector.load %arg8[%c0_67, %c0_68] : memref<1x16xf32, #tpu.memory_space<vmem>>, vector<1x16xf32>
      %119 = vector.broadcast %118 : vector<1x16xf32> to vector<16x16xf32>
      %120 = arith.addf %117, %119 : vector<16x16xf32>
      %c0_69 = arith.constant 0 : index
      %c0_70 = arith.constant 0 : index
      %121 = vector.load %arg6[%c0_69, %c0_70] : memref<16x16xf32, #tpu.memory_space<vmem>>, vector<16x16xf32>
      %cst_71 = arith.constant dense<0.000000e+00> : vector<16x16xf32>
      %122 = tpu.matmul %115, %121, %cst_71 {dimension_numbers = #tpu.dot_dimension_numbers<[1], [0], [0], [1], [0, 0, 1, 1], [], []>} : vector<16x16xf32>, vector<16x16xf32>, vector<16x16xf32> -> vector<16x16xf32>
      %c0_72 = arith.constant 0 : index
      %c0_73 = arith.constant 0 : index
      %123 = vector.load %arg9[%c0_72, %c0_73] : memref<1x16xf32, #tpu.memory_space<vmem>>, vector<1x16xf32>
      %124 = vector.broadcast %123 : vector<1x16xf32> to vector<16x16xf32>
      %125 = arith.addf %122, %124 : vector<16x16xf32>
      %126 = vector.shape_cast %120 : vector<16x16xf32> to vector<16x4x4xf32>
      %127 = tpu.transpose %126, [1, 0, 2] : vector<16x4x4xf32> -> vector<4x16x4xf32>
      %128 = vector.shape_cast %125 : vector<16x16xf32> to vector<16x4x4xf32>
      %129 = tpu.transpose %128, [1, 0, 2] : vector<16x4x4xf32> -> vector<4x16x4xf32>
      %c0_74 = arith.constant 0 : index
      %c0_75 = arith.constant 0 : index
      %c0_76 = arith.constant 0 : index
      %c0_77 = arith.constant 0 : index
      %130 = vector.load %arg21[%c0_74, %c0_75, %c0_76, %c0_77] : memref<1x4x16x4xf32, #tpu.memory_space<vmem>>, vector<1x4x16x4xf32>
      %131 = vector.shape_cast %130 : vector<1x4x16x4xf32> to vector<4x16x4xf32>
      %132 = vector.shape_cast %127 : vector<4x16x4xf32> to vector<1x4x16x4xf32>
      tpu.vector_store %arg21[%c0_74, %c0_75, %c0_76, %c0_77], %132 {strides = array<i32>} : memref<1x4x16x4xf32, #tpu.memory_space<vmem>>, vector<1x4x16x4xf32>,
      %c0_78 = arith.constant 0 : index
      %c0_79 = arith.constant 0 : index
      %c0_80 = arith.constant 0 : index
      %c0_81 = arith.constant 0 : index
      %133 = vector.load %arg22[%c0_78, %c0_79, %c0_80, %c0_81] : memref<1x4x16x4xf32, #tpu.memory_space<vmem>>, vector<1x4x16x4xf32>
      %134 = vector.shape_cast %133 : vector<1x4x16x4xf32> to vector<4x16x4xf32>
      %135 = vector.shape_cast %129 : vector<4x16x4xf32> to vector<1x4x16x4xf32>
      tpu.vector_store %arg22[%c0_78, %c0_79, %c0_80, %c0_81], %135 {strides = array<i32>} : memref<1x4x16x4xf32, #tpu.memory_space<vmem>>, vector<1x4x16x4xf32>,
    } else {
    }
    %c0 = arith.constant 0 : index
    %c0_1 = arith.constant 0 : index
    %c0_2 = arith.constant 0 : index
    %3 = vector.load %arg2[%c0, %c0_1, %c0_2] : memref<1x8x16xf32, #tpu.memory_space<vmem>>, vector<1x8x16xf32>
    %4 = vector.shape_cast %3 : vector<1x8x16xf32> to vector<8x16xf32>
    %c0_3 = arith.constant 0 : index
    %c0_4 = arith.constant 0 : index
    %5 = vector.load %arg4[%c0_3, %c0_4] : memref<16x16xf32, #tpu.memory_space<vmem>>, vector<16x16xf32>
    %cst = arith.constant dense<0.000000e+00> : vector<8x16xf32>
    %6 = tpu.matmul %4, %5, %cst {dimension_numbers = #tpu.dot_dimension_numbers<[1], [0], [0], [1], [0, 0, 1, 1], [], []>} : vector<8x16xf32>, vector<16x16xf32>, vector<8x16xf32> -> vector<8x16xf32>
    %c0_5 = arith.constant 0 : index
    %c0_6 = arith.constant 0 : index
    %7 = vector.load %arg7[%c0_5, %c0_6] : memref<1x16xf32, #tpu.memory_space<vmem>>, vector<1x16xf32>
    %8 = vector.broadcast %7 : vector<1x16xf32> to vector<8x16xf32>
    %9 = arith.addf %6, %8 : vector<8x16xf32>
    %10 = vector.shape_cast %9 : vector<8x16xf32> to vector<8x4x4xf32>
    %11 = tpu.transpose %10, [1, 0, 2] : vector<8x4x4xf32> -> vector<4x8x4xf32>
    %cst_7 = arith.constant 5.000000e-01 : f32
    %12 = vector.broadcast %cst_7 : f32 to vector<4x8x4xf32>
    %13 = arith.mulf %11, %12 : vector<4x8x4xf32>
    %cst_8 = arith.constant 0xFF800000 : f32
    %14 = vector.broadcast %cst_8 : f32 to vector<4x8x1xf32>
    %cst_9 = arith.constant 0.000000e+00 : f32
    %15 = vector.broadcast %cst_9 : f32 to vector<4x8x1xf32>
    %cst_10 = arith.constant 0.000000e+00 : f32
    %16 = vector.broadcast %cst_10 : f32 to vector<4x8x4xf32>
    %c0_i32_11 = arith.constant 0 : i32
    %17 = arith.index_cast %c0_i32_11 : i32 to index
    %c0_12 = arith.constant 0 : index
    %c0_13 = arith.constant 0 : index
    %c0_14 = arith.constant 0 : index
    %18 = vector.load %arg21[%17, %c0_12, %c0_13, %c0_14] : memref<1x4x16x4xf32, #tpu.memory_space<vmem>>, vector<1x4x16x4xf32>
    %19 = vector.shape_cast %18 : vector<1x4x16x4xf32> to vector<4x16x4xf32>
    %20 = arith.index_cast %c0_i32_11 : i32 to index
    %c0_15 = arith.constant 0 : index
    %c0_16 = arith.constant 0 : index
    %c0_17 = arith.constant 0 : index
    %21 = vector.load %arg22[%20, %c0_15, %c0_16, %c0_17] : memref<1x4x16x4xf32, #tpu.memory_space<vmem>>, vector<1x4x16x4xf32>
    %22 = vector.shape_cast %21 : vector<1x4x16x4xf32> to vector<4x16x4xf32>
    "tpu.trace_start"() <{level = 10 : i32, message = "hqd,hkd->hqk"}> : () -> ()
    %cst_18 = arith.constant dense<0.000000e+00> : vector<4x8x16xf32>
    %23 = tpu.matmul %13, %19, %cst_18 {dimension_numbers = #tpu.dot_dimension_numbers<[2], [2], [1], [1], [0, 0, 0, 1, 1, 1], [0], [0]>} : vector<4x8x4xf32>, vector<4x16x4xf32>, vector<4x8x16xf32> -> vector<4x8x16xf32>
    "tpu.trace_stop"() : () -> ()
    %cst_19 = arith.constant dense<0xFF800000> : vector<4x8xf32>
    %24 = vector.multi_reduction <maximumf>, %23, %cst_19 [2] : vector<4x8x16xf32> to vector<4x8xf32>
    %25 = vector.shape_cast %24 : vector<4x8xf32> to vector<4x8x1xf32>
    %26 = arith.maximumf %14, %25 : vector<4x8x1xf32>
    %27 = arith.subf %14, %26 : vector<4x8x1xf32>
    %28 = math.exp %27 : vector<4x8x1xf32>
    %29 = vector.broadcast %26 : vector<4x8x1xf32> to vector<4x8x16xf32>
    %30 = arith.subf %23, %29 : vector<4x8x16xf32>
    %31 = math.exp %30 : vector<4x8x16xf32>
    %32 = arith.mulf %28, %15 : vector<4x8x1xf32>
    %cst_20 = arith.constant dense<0.000000e+00> : vector<4x8xf32>
    %33 = vector.multi_reduction <add>, %31, %cst_20 [2] : vector<4x8x16xf32> to vector<4x8xf32>
    %34 = vector.shape_cast %33 : vector<4x8xf32> to vector<4x8x1xf32>
    %35 = arith.addf %32, %34 : vector<4x8x1xf32>
    "tpu.trace_start"() <{level = 10 : i32, message = "hqk,hkd->hqd"}> : () -> ()
    %cst_21 = arith.constant dense<0.000000e+00> : vector<4x8x4xf32>
    %36 = tpu.matmul %31, %22, %cst_21 {dimension_numbers = #tpu.dot_dimension_numbers<[2], [1], [1], [2], [0, 0, 0, 1, 1, 2], [0], [0]>} : vector<4x8x16xf32>, vector<4x16x4xf32>, vector<4x8x4xf32> -> vector<4x8x4xf32>
    "tpu.trace_stop"() : () -> ()
    %37 = vector.broadcast %28 : vector<4x8x1xf32> to vector<4x8x4xf32>
    %38 = arith.mulf %37, %16 : vector<4x8x4xf32>
    %39 = arith.addf %38, %36 : vector<4x8x4xf32>
    %c1_i32 = arith.constant 1 : i32
    %40 = tpu.reciprocal %35 : vector<4x8x1xf32> -> vector<4x8x1xf32>
    %41 = vector.broadcast %40 : vector<4x8x1xf32> to vector<4x8x4xf32>
    %42 = arith.mulf %39, %41 : vector<4x8x4xf32>
    %c0_22 = arith.constant 0 : index
    %c0_23 = arith.constant 0 : index
    %c0_24 = arith.constant 0 : index
    %43 = vector.load %arg10[%c0_22, %c0_23, %c0_24] : memref<4x4x16xf32, #tpu.memory_space<vmem>>, vector<4x4x16xf32>
    "tpu.trace_start"() <{level = 10 : i32, message = "hqd,hdm->hqm"}> : () -> ()
    %cst_25 = arith.constant dense<0.000000e+00> : vector<4x8x16xf32>
    %44 = tpu.matmul %42, %43, %cst_25 {dimension_numbers = #tpu.dot_dimension_numbers<[2], [1], [1], [2], [0, 0, 0, 1, 1, 2], [0], [0]>} : vector<4x8x4xf32>, vector<4x4x16xf32>, vector<4x8x16xf32> -> vector<4x8x16xf32>
    "tpu.trace_stop"() : () -> ()
    %cst_26 = arith.constant dense<0.000000e+00> : vector<8x16xf32>
    %45 = vector.multi_reduction <add>, %44, %cst_26 [0] : vector<4x8x16xf32> to vector<8x16xf32>
    %c0_27 = arith.constant 0 : index
    %c0_28 = arith.constant 0 : index
    %46 = vector.load %arg11[%c0_27, %c0_28] : memref<1x16xf32, #tpu.memory_space<vmem>>, vector<1x16xf32>
    %47 = vector.broadcast %46 : vector<1x16xf32> to vector<8x16xf32>
    %48 = arith.addf %45, %47 : vector<8x16xf32>
    %49 = arith.addf %4, %48 : vector<8x16xf32>
    %c0_29 = arith.constant 0 : index
    %c0_30 = arith.constant 0 : index
    %50 = vector.load %arg12[%c0_29, %c0_30] : memref<1x16xf32, #tpu.memory_space<vmem>>, vector<1x16xf32>
    %c0_31 = arith.constant 0 : index
    %c0_32 = arith.constant 0 : index
    %51 = vector.load %arg13[%c0_31, %c0_32] : memref<1x16xf32, #tpu.memory_space<vmem>>, vector<1x16xf32>
    %cst_33 = arith.constant dense<0.000000e+00> : vector<8xf32>
    %52 = vector.multi_reduction <add>, %49, %cst_33 [1] : vector<8x16xf32> to vector<8xf32>
    %53 = vector.shape_cast %52 : vector<8xf32> to vector<8x1xf32>
    %cst_34 = arith.constant 1.600000e+01 : f32
    %54 = vector.broadcast %cst_34 : f32 to vector<8x1xf32>
    %55 = arith.divf %53, %54 : vector<8x1xf32>
    %56 = vector.broadcast %55 : vector<8x1xf32> to vector<8x16xf32>
    %57 = arith.subf %49, %56 : vector<8x16xf32>
    %58 = arith.mulf %57, %57 : vector<8x16xf32>
    %cst_35 = arith.constant dense<0.000000e+00> : vector<8xf32>
    %59 = vector.multi_reduction <add>, %58, %cst_35 [1] : vector<8x16xf32> to vector<8xf32>
    %60 = vector.shape_cast %59 : vector<8xf32> to vector<8x1xf32>
    %cst_36 = arith.constant 1.600000e+01 : f32
    %61 = vector.broadcast %cst_36 : f32 to vector<8x1xf32>
    %62 = arith.divf %60, %61 : vector<8x1xf32>
    %63 = vector.broadcast %55 : vector<8x1xf32> to vector<8x16xf32>
    %64 = arith.subf %49, %63 : vector<8x16xf32>
    %cst_37 = arith.constant 9.99999974E-6 : f32
    %65 = vector.broadcast %cst_37 : f32 to vector<8x1xf32>
    %66 = arith.addf %62, %65 : vector<8x1xf32>
    %67 = math.rsqrt %66 : vector<8x1xf32>
    %68 = vector.broadcast %67 : vector<8x1xf32> to vector<8x16xf32>
    %69 = arith.mulf %64, %68 : vector<8x16xf32>
    %70 = vector.broadcast %50 : vector<1x16xf32> to vector<8x16xf32>
    %71 = arith.mulf %69, %70 : vector<8x16xf32>
    %72 = vector.broadcast %51 : vector<1x16xf32> to vector<8x16xf32>
    %73 = arith.addf %71, %72 : vector<8x16xf32>
    %c0_38 = arith.constant 0 : index
    %c0_39 = arith.constant 0 : index
    %74 = vector.load %arg14[%c0_38, %c0_39] : memref<16x64xf32, #tpu.memory_space<vmem>>, vector<16x64xf32>
    %cst_40 = arith.constant dense<0.000000e+00> : vector<8x64xf32>
    %75 = tpu.matmul %73, %74, %cst_40 {dimension_numbers = #tpu.dot_dimension_numbers<[1], [0], [0], [1], [0, 0, 1, 1], [], []>} : vector<8x16xf32>, vector<16x64xf32>, vector<8x64xf32> -> vector<8x64xf32>
    %c0_41 = arith.constant 0 : index
    %c0_42 = arith.constant 0 : index
    %76 = vector.load %arg15[%c0_41, %c0_42] : memref<1x64xf32, #tpu.memory_space<vmem>>, vector<1x64xf32>
    %77 = vector.broadcast %76 : vector<1x64xf32> to vector<8x64xf32>
    %78 = arith.addf %75, %77 : vector<8x64xf32>
    %cst_43 = arith.constant 0.000000e+00 : f32
    %79 = vector.broadcast %cst_43 : f32 to vector<8x64xf32>
    %80 = arith.maximumf %78, %79 : vector<8x64xf32>
    %c0_44 = arith.constant 0 : index
    %c0_45 = arith.constant 0 : index
    %81 = vector.load %arg16[%c0_44, %c0_45] : memref<64x16xf32, #tpu.memory_space<vmem>>, vector<64x16xf32>
    %cst_46 = arith.constant dense<0.000000e+00> : vector<8x16xf32>
    %82 = tpu.matmul %80, %81, %cst_46 {dimension_numbers = #tpu.dot_dimension_numbers<[1], [0], [0], [1], [0, 0, 1, 1], [], []>} : vector<8x64xf32>, vector<64x16xf32>, vector<8x16xf32> -> vector<8x16xf32>
    %c0_47 = arith.constant 0 : index
    %c0_48 = arith.constant 0 : index
    %83 = vector.load %arg17[%c0_47, %c0_48] : memref<1x16xf32, #tpu.memory_space<vmem>>, vector<1x16xf32>
    %84 = vector.broadcast %83 : vector<1x16xf32> to vector<8x16xf32>
    %85 = arith.addf %82, %84 : vector<8x16xf32>
    %86 = arith.addf %73, %85 : vector<8x16xf32>
    %c0_49 = arith.constant 0 : index
    %c0_50 = arith.constant 0 : index
    %87 = vector.load %arg18[%c0_49, %c0_50] : memref<1x16xf32, #tpu.memory_space<vmem>>, vector<1x16xf32>
    %c0_51 = arith.constant 0 : index
    %c0_52 = arith.constant 0 : index
    %88 = vector.load %arg19[%c0_51, %c0_52] : memref<1x16xf32, #tpu.memory_space<vmem>>, vector<1x16xf32>
    %cst_53 = arith.constant dense<0.000000e+00> : vector<8xf32>
    %89 = vector.multi_reduction <add>, %86, %cst_53 [1] : vector<8x16xf32> to vector<8xf32>
    %90 = vector.shape_cast %89 : vector<8xf32> to vector<8x1xf32>
    %cst_54 = arith.constant 1.600000e+01 : f32
    %91 = vector.broadcast %cst_54 : f32 to vector<8x1xf32>
    %92 = arith.divf %90, %91 : vector<8x1xf32>
    %93 = vector.broadcast %92 : vector<8x1xf32> to vector<8x16xf32>
    %94 = arith.subf %86, %93 : vector<8x16xf32>
    %95 = arith.mulf %94, %94 : vector<8x16xf32>
    %cst_55 = arith.constant dense<0.000000e+00> : vector<8xf32>
    %96 = vector.multi_reduction <add>, %95, %cst_55 [1] : vector<8x16xf32> to vector<8xf32>
    %97 = vector.shape_cast %96 : vector<8xf32> to vector<8x1xf32>
    %cst_56 = arith.constant 1.600000e+01 : f32
    %98 = vector.broadcast %cst_56 : f32 to vector<8x1xf32>
    %99 = arith.divf %97, %98 : vector<8x1xf32>
    %100 = vector.broadcast %92 : vector<8x1xf32> to vector<8x16xf32>
    %101 = arith.subf %86, %100 : vector<8x16xf32>
    %cst_57 = arith.constant 9.99999974E-6 : f32
    %102 = vector.broadcast %cst_57 : f32 to vector<8x1xf32>
    %103 = arith.addf %99, %102 : vector<8x1xf32>
    %104 = math.rsqrt %103 : vector<8x1xf32>
    %105 = vector.broadcast %104 : vector<8x1xf32> to vector<8x16xf32>
    %106 = arith.mulf %101, %105 : vector<8x16xf32>
    %107 = vector.broadcast %87 : vector<1x16xf32> to vector<8x16xf32>
    %108 = arith.mulf %106, %107 : vector<8x16xf32>
    %109 = vector.broadcast %88 : vector<1x16xf32> to vector<8x16xf32>
    %110 = arith.addf %108, %109 : vector<8x16xf32>
    %c0_58 = arith.constant 0 : index
    %c0_59 = arith.constant 0 : index
    %c0_60 = arith.constant 0 : index
    %111 = vector.load %arg20[%c0_58, %c0_59, %c0_60] : memref<1x8x16xf32, #tpu.memory_space<vmem>>, vector<1x8x16xf32>
    %112 = vector.shape_cast %111 : vector<1x8x16xf32> to vector<8x16xf32>
    %113 = vector.shape_cast %110 : vector<8x16xf32> to vector<1x8x16xf32>
    tpu.vector_store %arg20[%c0_58, %c0_59, %c0_60], %113 {strides = array<i32>} : memref<1x8x16xf32, #tpu.memory_space<vmem>>, vector<1x8x16xf32>,
    return
  }
  func.func @transform_0(%arg0: i32, %arg1: i32) -> (i32, i32, i32) {
    %c0_i32 = arith.constant 0 : i32
    %c0_i32_0 = arith.constant 0 : i32
    return %arg0, %arg1, %c0_i32 : i32, i32, i32
  }
  func.func @transform_1(%arg0: i32, %arg1: i32) -> (i32, i32, i32) {
    %c0_i32 = arith.constant 0 : i32
    %c0_i32_0 = arith.constant 0 : i32
    %c0_i32_1 = arith.constant 0 : i32
    return %arg0, %c0_i32, %c0_i32_0 : i32, i32, i32
  }
  func.func @transform_2(%arg0: i32, %arg1: i32) -> (i32, i32) {
    %c0_i32 = arith.constant 0 : i32
    %c0_i32_0 = arith.constant 0 : i32
    %c0_i32_1 = arith.constant 0 : i32
    return %c0_i32, %c0_i32_0 : i32, i32
  }
  func.func @transform_3(%arg0: i32, %arg1: i32) -> (i32, i32) {
    %c0_i32 = arith.constant 0 : i32
    %c0_i32_0 = arith.constant 0 : i32
    %c0_i32_1 = arith.constant 0 : i32
    return %c0_i32, %c0_i32_0 : i32, i32
  }
  func.func @transform_4(%arg0: i32, %arg1: i32) -> (i32, i32) {
    %c0_i32 = arith.constant 0 : i32
    %c0_i32_0 = arith.constant 0 : i32
    %c0_i32_1 = arith.constant 0 : i32
    return %c0_i32, %c0_i32_0 : i32, i32
  }
  func.func @transform_5(%arg0: i32, %arg1: i32) -> (i32, i32) {
    %c0_i32 = arith.constant 0 : i32
    %c0_i32_0 = arith.constant 0 : i32
    %c0_i32_1 = arith.constant 0 : i32
    return %c0_i32, %c0_i32_0 : i32, i32
  }
  func.func @transform_6(%arg0: i32, %arg1: i32) -> (i32, i32) {
    %c0_i32 = arith.constant 0 : i32
    %c0_i32_0 = arith.constant 0 : i32
    %c0_i32_1 = arith.constant 0 : i32
    return %c0_i32, %c0_i32_0 : i32, i32
  }
  func.func @transform_7(%arg0: i32, %arg1: i32) -> (i32, i32) {
    %c0_i32 = arith.constant 0 : i32
    %c0_i32_0 = arith.constant 0 : i32
    %c0_i32_1 = arith.constant 0 : i32
    return %c0_i32, %c0_i32_0 : i32, i32
  }
  func.func @transform_8(%arg0: i32, %arg1: i32) -> (i32, i32, i32) {
    %c0_i32 = arith.constant 0 : i32
    %c0_i32_0 = arith.constant 0 : i32
    %c0_i32_1 = arith.constant 0 : i32
    %c0_i32_2 = arith.constant 0 : i32
    return %c0_i32, %c0_i32_0, %c0_i32_1 : i32, i32, i32
  }
  func.func @transform_9(%arg0: i32, %arg1: i32) -> (i32, i32) {
    %c0_i32 = arith.constant 0 : i32
    %c0_i32_0 = arith.constant 0 : i32
    %c0_i32_1 = arith.constant 0 : i32
    return %c0_i32, %c0_i32_0 : i32, i32
  }
  func.func @transform_10(%arg0: i32, %arg1: i32) -> (i32, i32) {
    %c0_i32 = arith.constant 0 : i32
    %c0_i32_0 = arith.constant 0 : i32
    %c0_i32_1 = arith.constant 0 : i32
    return %c0_i32, %c0_i32_0 : i32, i32
  }
  func.func @transform_11(%arg0: i32, %arg1: i32) -> (i32, i32) {
    %c0_i32 = arith.constant 0 : i32
    %c0_i32_0 = arith.constant 0 : i32
    %c0_i32_1 = arith.constant 0 : i32
    return %c0_i32, %c0_i32_0 : i32, i32
  }
  func.func @transform_12(%arg0: i32, %arg1: i32) -> (i32, i32) {
    %c0_i32 = arith.constant 0 : i32
    %c0_i32_0 = arith.constant 0 : i32
    %c0_i32_1 = arith.constant 0 : i32
    return %c0_i32, %c0_i32_0 : i32, i32
  }
  func.func @transform_13(%arg0: i32, %arg1: i32) -> (i32, i32) {
    %c0_i32 = arith.constant 0 : i32
    %c0_i32_0 = arith.constant 0 : i32
    %c0_i32_1 = arith.constant 0 : i32
    return %c0_i32, %c0_i32_0 : i32, i32
  }
  func.func @transform_14(%arg0: i32, %arg1: i32) -> (i32, i32) {
    %c0_i32 = arith.constant 0 : i32
    %c0_i32_0 = arith.constant 0 : i32
    %c0_i32_1 = arith.constant 0 : i32
    return %c0_i32, %c0_i32_0 : i32, i32
  }
  func.func @transform_15(%arg0: i32, %arg1: i32) -> (i32, i32) {
    %c0_i32 = arith.constant 0 : i32
    %c0_i32_0 = arith.constant 0 : i32
    %c0_i32_1 = arith.constant 0 : i32
    return %c0_i32, %c0_i32_0 : i32, i32
  }
  func.func @transform_16(%arg0: i32, %arg1: i32) -> (i32, i32) {
    %c0_i32 = arith.constant 0 : i32
    %c0_i32_0 = arith.constant 0 : i32
    %c0_i32_1 = arith.constant 0 : i32
    return %c0_i32, %c0_i32_0 : i32, i32
  }
  func.func @transform_17(%arg0: i32, %arg1: i32) -> (i32, i32) {
    %c0_i32 = arith.constant 0 : i32
    %c0_i32_0 = arith.constant 0 : i32
    %c0_i32_1 = arith.constant 0 : i32
    return %c0_i32, %c0_i32_0 : i32, i32
  }
  func.func @transform_18(%arg0: i32, %arg1: i32) -> (i32, i32, i32) {
    %c0_i32 = arith.constant 0 : i32
    %c0_i32_0 = arith.constant 0 : i32
    return %arg0, %arg1, %c0_i32 : i32, i32, i32
  }
}

</mosaic_0001>

<bundles_post_ra>
// kernel: tpu_custom_call.1
= control target key start
LH: loop header
LB: loop body
LE: loop exit
PB: predicated region body
PF: predicated region fallthrough
CT: control target
= control target key end

     0   :  { %s4329_s0 = inlined_call_operand.vmem [shape: f32[2,16,16], index: 0, kind: input, shape index: {}]   ;;  %s4330_s1 = inlined_call_operand.vmem [shape: f32[2,16,16], index: 1, kind: input, shape index: {}]   ;;  %s4331_s2 = inlined_call_operand.vmem [shape: f32[16,16], index: 2, kind: input, shape index: {}]   ;;  %s4332_s3 = inlined_call_operand.hbm [shape: f32[16,16], index: 3, kind: input, shape index: {}]   ;;  %s4333_s4 = inlined_call_operand.hbm [shape: f32[16,16], index: 4, kind: input, shape index: {}]   ;;  %s4334_s5 = inlined_call_operand.vmem [shape: f32[1,16], index: 5, kind: input, shape index: {}]   ;;  %s4335_s6 = inlined_call_operand.vmem [shape: f32[1,16], index: 6, kind: input, shape index: {}]   ;;  %s4336_s7 = inlined_call_operand.vmem [shape: f32[1,16], index: 7, kind: input, shape index: {}]   ;;  %s4337_s8 = inlined_call_operand.hbm [shape: f32[4,4,16], index: 8, kind: input, shape index: {}]   ;;  %s4338_s9 = inlined_call_operand.vmem [shape: f32[1,16], index: 9, kind: input, shape index: {}]   ;;  %s4339_s10 = inlined_call_operand.vmem [shape: f32[1,16], index: 10, kind: input, shape index: {}]   ;;  %s4340_s11 = inlined_call_operand.vmem [shape: f32[1,16], index: 11, kind: input, shape index: {}]   ;;  %s4341_s12 = inlined_call_operand.hbm [shape: f32[16,64], index: 12, kind: input, shape index: {}]   ;;  %s4342_s13 = inlined_call_operand.vmem [shape: f32[1,64], index: 13, kind: input, shape index: {}]   ;;  %s4343_s14 = inlined_call_operand.vmem [shape: f32[64,16], index: 14, kind: input, shape index: {}]   ;;  %s4344_s15 = inlined_call_operand.vmem [shape: f32[1,16], index: 15, kind: input, shape index: {}]   ;;  %s4345_s16 = inlined_call_operand.vmem [shape: f32[1,16], index: 16, kind: input, shape index: {}]   ;;  %s4346_s17 = inlined_call_operand.vmem [shape: f32[1,16], index: 17, kind: input, shape index: {}]   ;;  %s4347_s18 = inlined_call_operand.hbm [shape: f32[2,16,16], index: 18, kind: output, shape index: {}]  }
   0x1   :  { %4359 = sst [smem:[#allocation25_spill]] %s4329_s0 }
   0x2   :  { %4360 = sst [smem:[#allocation26_spill]] %s4330_s1 }
   0x3   :  { %4361 = sst [smem:[#allocation27_spill]] %s4331_s2 }
   0x4   :  { %4362 = sst [smem:[#allocation28_spill]] %s4332_s3 }
   0x5   :  { %4363 = sst [smem:[#allocation29_spill]] %s4333_s4 }
   0x6   :  { %4364 = sst [smem:[#allocation30_spill]] %s4337_s8 }
   0x7   :  { %4365 = sst [smem:[#allocation31_spill]] %s4341_s12 }
   0x8   :  { %4366 = sst [smem:[#allocation32_spill]] %s4345_s16 }
   0x9   :  { %4367 = sst [smem:[#allocation33_spill]] %s4346_s17 }
   0xa   :  { %4368 = sst [smem:[#allocation34_spill]] %s4347_s18 }
   0xb   :  { %23 = vsyncpa [#allocation5], 0 }
   0xc   :  { %24 = vsyncpa [#allocation8], 0 }
   0xd   :  { %25 = vsyncpa [#allocation11], 0 }
   0xe   :  { %26 = vsyncpa [#allocation6], 0 }
   0xf   :  { %28 = vsyncpa [#allocation6 + $0x1], 0  ;;  %s3828_s27 = smov 0   ;;  %s3830_s28 = smov 0  }
  0x10   :  { %s3832_s29 = smov 0   ;;  %s3834_s30 = smov 0  }
  0x11   :  { %s3836_s0 = smov 0   ;;  %s3838_s19 = smov 0  }
  0x12   :  { %s3840_s1 = smov 0   ;;  %s3842_s20 = smov 0  }
  0x13 LB: > { %4369 = sst [smem:[#allocation17_spill]] %s3682_s27  ;;  %s3092_s21 = sadd.s32 4294967295, %s3710_s20   ;;  %s3710_s20 = sphi %s3842_s20, %s34_s20   ;;  %s3706_s1 = sphi %s3840_s1, %s4407_s1   ;;  %s3702_s19 = sphi %s3838_s19, %s4403_s19   ;;  %s3698_s0 = sphi %s3836_s0, %s4402_s0   ;;  %s3694_s30 = sphi %s3834_s30, %s4401_s30   ;;  %s3690_s29 = sphi %s3832_s29, %s4400_s29   ;;  %s3686_s28 = sphi %s3830_s28, %s4406_s28   ;;  %s3682_s27 = sphi %s3828_s27, %s4405_s27  }
  0x14   : > { %4370 = sst [smem:[#allocation18_spill]] %s3690_s29  ;;  %s3093_s22 = sadd.s32 4294967294, %s3710_s20  }
  0x15   : > { %4371 = sst [smem:[#allocation19_spill]] %s3702_s19  ;;  %s43_s2 = sadd.s32 1, %s3702_s19 }
  0x16   : > { %4372 = sst [smem:[#allocation20_spill]] %s3706_s1  ;;  %s46_s23 = sadd.s32 1, %s3706_s1 }
  0x17   : > { %p44_p0 = scmp.ge.s32.totalorder %s43_s2, 2  ;;  %s445_s24 = sadd.s32 1, %s3690_s29 }
  0x18   : > { %p455_p1 = scmp.ne.s32.totalorder %s3690_s29, %s3686_s28  ;;  %p456_p2 = scmp.eq.s32.totalorder %s3092_s21, 3 }
  0x19   : > { %s4409_s2 = smov (%p44_p0, %s43_s2), 0  ;;  %s4411_s23 = smov (!%p44_p0, %s46_s23), %s3706_s1 }
  0x1a   : > { %4373 = sst [smem:[#allocation21_spill]] %s4409_s2  ;;  %s441_s25 = ssub.s32 %s3702_s19, %s4409_s2 }
  0x1b   : > { %p3880_p3 = por %p456_p2, %p455_p1  ;;  %p48_p4 = scmp.ge.s32.totalorder %s4411_s23, 2 }
  0x1c   : > { %p461_p5 = scmp.ne.s32.totalorder %s3686_s28, %s3682_s27  ;;  %p462_p6 = scmp.eq.s32.totalorder %s3093_s22, 3 }
  0x1d   : > { %p3094_p7 = scmp.ge.s32.totalorder %s3710_s20, 1  ;;  %s4413_s23 = smov (%p48_p4, %s4411_s23), 0 }
  0x1e   : > { %4375 = sst [smem:[#allocation22_spill]] %s4413_s23  ;;  %p3889_p8 = por %p462_p6, %p461_p5 }
  0x1f   : > { %p469_p9 = scmp.lt.s32.totalorder %s3710_s20, 5  ;;  %s440_s17 = ssub.s32 %s3706_s1, %s4413_s23 }
  0x20   : > { %s4376_s18 = scalar_select %p3889_p8, 1, 0 }
  0x21   : > { %s442_s16 = sor.u32 %s441_s25, %s440_s17  ;;  %p3896_p10 = pnand %p3094_p7, %p469_p9 }
  0x22   : > { %4377 = sst [smem:[#allocation23_spill]] %s4376_s18  ;;  %p443_p11 = scmp.eq.s32.totalorder %s442_s16, 0 }
  0x23   : > { %p3900_p12 = scmp.eq.s32.totalorder %s3092_s21, 0  ;;  %p3364_p13 = pneg %p3896_p10 }
  0x24   : > { %s3907_s22 = scalar_select %p443_p11, %s3690_s29, %s445_s24  }
  0x25   : > { %p3911_p0 = pnand %p3900_p12, %p3364_p13  ;;  %s3712_s17 = smov [#allocation7]  }
  0x26   : > { %4380 = sst [smem:[#allocation24_spill]] %s3907_s22  ;;  %s497_s25 = sshll.u32 %s3712_s17, 4  ;;  %s498_s25 = int_to_ptr.vmem [resolvable:$true] %s497_s25 }
  0x27   : > { %p3504_p1 = pneg %p3911_p0  ;;  %s3513_s16 = scalar_lea.vmem %s498_s25, 256 }
  0x28   : > { %p3514_p2 = scmp.ne.s32.totalorder %s498_s25, %s3513_s16  ;;  %p3521_p6 = scmp.lt.s32.totalorder %s498_s25, %s498_s25 }
  0x29   : > { %p3522_p7 = scmp.lt.s32.totalorder %s3513_s16, %s3513_s16 }
  0x2a   : > { %p3516_p4 = pnand %p3514_p2, %p3504_p1 }
  0x2b   : > { %p3523_p9 = por %p3522_p7, %p3521_p6 }
  0x2c   : > { %p3517_p5 = pneg %p3516_p4 }
  0x2e   : > { %p3524_p11 = pnand %p3523_p9, %p3517_p5 }
  0x30   : > { %3527 = shalt.err (!%p3524_p11)
}
  0x31   : > { %s4357_s21 = smov 128   ;;  %s3714_s24 = smov 8  }
  0x32   : > { %s4382_s4 = sld [smem:[#allocation29_spill]]  ;;  %s3715_s1 = smov [#allocation4]  }
  0x33   : > { %s484_s22 = sshll.u32 %s3715_s1, 4  ;;  %s3716_s29 = smov [#allocation9]   ;;  %s485_s22 = int_to_ptr.vmem [resolvable:$true] %s484_s22 }
  0x34   : > { %s519_s27 = sshll.u32 %s3716_s29, 4  ;;  %s3539_s16 = scalar_lea.vmem %s485_s22, 256  ;;  %s520_s27 = int_to_ptr.vmem [resolvable:$true] %s519_s27 }
  0x35   : > { %p3540_p13 = scmp.ne.s32.totalorder %s485_s22, %s3539_s16  ;;  %p3547_p5 = scmp.lt.s32.totalorder %s485_s22, %s485_s22 }
  0x36   : > { %p3548_p6 = scmp.lt.s32.totalorder %s3539_s16, %s3539_s16 }
  0x37   : > { %p3542_p2 = pnand %p3540_p13, %p3504_p1 }
  0x38   : > { %3370 = dma.hbm_to_vmem [thread:$0]  (!%p3911_p0), %s4382_s4, 256, %s498_s25, [#allocation8], %s4357_s21, %s4357_s21, %s3714_s24  }
  0x39   : > { %p3543_p4 = pneg %p3542_p2  ;;  %p3549_p7 = por %p3548_p6, %p3547_p5 }
  0x3b   : > { %p3550_p9 = pnand %p3549_p7, %p3543_p4 }
  0x3d   : > { %3553 = shalt.err (!%p3550_p9)
}
  0x3e   : > { %s4383_s3 = sld [smem:[#allocation28_spill]]  ;;  %s3565_s23 = scalar_lea.vmem %s520_s27, 256 }
  0x3f   : > { %p3566_p11 = scmp.ne.s32.totalorder %s520_s27, %s3565_s23  ;;  %p3573_p8 = scmp.lt.s32.totalorder %s520_s27, %s520_s27 }
  0x40   : > { %p3574_p5 = scmp.lt.s32.totalorder %s3565_s23, %s3565_s23 }
  0x41   : > { %p3568_p13 = pnand %p3566_p11, %p3504_p1 }
  0x42   : > { %p3575_p4 = por %p3574_p5, %p3573_p8 }
  0x43   : > { %p3569_p2 = pneg %p3568_p13 }
  0x44   : > { %3367 = dma.hbm_to_vmem [thread:$0]  (!%p3911_p0), %s4383_s3, 256, %s485_s22, [#allocation5], %s4357_s21, %s4357_s21, %s3714_s24  }
  0x45   : > { %p3576_p6 = pnand %p3575_p4, %p3569_p2 }
  0x47   : > { %3579 = shalt.err (!%p3576_p6)
}
  0x48   : > { %s3717_s25 = smov 64   ;;  %s3718_s17 = smov 4  }
  0x49   : > { %s4384_s8 = sld [smem:[#allocation30_spill]]  ;;  %s3719_s22 = smov [#allocation10]  }
  0x4a   : > { %s541_s29 = sshll.u32 %s3719_s22, 4  ;;  %s542_s29 = int_to_ptr.vmem [resolvable:$true] %s541_s29 }
  0x4b   : > { %s3591_s21 = scalar_lea.vmem %s542_s29, 256  ;;  %p3599_p11 = scmp.lt.s32.totalorder %s542_s29, %s542_s29 }
  0x4c   : > { %p3592_p7 = scmp.ne.s32.totalorder %s542_s29, %s3591_s21  ;;  %p3600_p13 = scmp.lt.s32.totalorder %s3591_s21, %s3591_s21 }
  0x4e   : > { %p3594_p9 = pnand %p3592_p7, %p3504_p1  ;;  %p3601_p2 = por %p3600_p13, %p3599_p11 }
  0x4f   : > { %3373 = dma.hbm_to_vmem [thread:$0]  (!%p3911_p0), %s4384_s8, 256, %s520_s27, [#allocation8], %s3717_s25, %s3717_s25, %s3718_s17  }
  0x50   : > { %p3595_p8 = pneg %p3594_p9 }
  0x52   : > { %p3602_p5 = pnand %p3601_p2, %p3595_p8 }
  0x54   : > { %3605 = shalt.err (!%p3602_p5)
}
  0x55   : > { %s4385_s23 = smov 128   ;;  %s4386_s12 = sld [smem:[#allocation31_spill]] }
  0x57   : > { %591 = sbr.rel (%p3896_p10) target bundleno = 2611 (0xa33), region = 92 }
  0x5b   : > { %3376 = dma.hbm_to_vmem [thread:$0]  (!%p3911_p0), %s4386_s12, 256, %s542_s29, [#allocation11], %s4385_s23, %s4385_s23, %s3714_s24  }
  0x5c   : > { %3665 = dma.done.wait (%p3900_p12), [#allocation5], 256  }
  0x5d   : > { %3667 = vsyncadd (%p3900_p12), [#allocation5], 4294967040 }
  0x5e   : > { %3669 = dma.done.wait (%p3900_p12), [#allocation8], 512  }
  0x5f   : > { %3671 = vsyncadd (%p3900_p12), [#allocation8], 4294966784 }
  0x60   : > { %3673 = dma.done.wait (%p3900_p12), [#allocation11], 256  }
  0x61   : > { %3675 = vsyncadd (%p3900_p12), [#allocation11], 4294967040  ;;  %s4358_s18 = sand.u32 1, %s3686_s28   ;;  %p665_p10 = scmp.lt.s32.totalorder %s3698_s0, 1 }
  0x62   : > { %s3976_s2 = sshll.u32 %s4358_s18, 3  ;;  %p667_p0 = scmp.lt.s32.totalorder %s3694_s30, 1 }
  0x63   : > { %s666_s21 = scalar_select %p665_p10, %s3698_s0, 1 }
  0x64   : > { %s668_s24 = scalar_select %p667_p0, %s3694_s30, 1 }
  0x65   : > { %s3106_s17 = sshll.u32 %s666_s21, 1  ;;  %s3167_s16 = sshll.u32 %s666_s21, 4 }
  0x66   : > { %s670_s1 = sadd.s32 %s3106_s17, %s668_s24  ;;  %s4387_s29 = sld [smem:[#allocation26_spill]] }
  0x67   : > { %s3107_s27 = sshll.u32 %s670_s1, 3  ;;  %s4388_s4 = sld [smem:[#allocation25_spill]] }
  0x68   : > { %s664_s12 = scalar_lea.vmem [#allocation12], %s3976_s2  ;;  %p3110_p12 = scmp.ne.s32.totalorder %s3694_s30, 0 }
  0x69   : > { %s3720_s21 = smov (!%p3110_p12), 120   ;;  %s3721_s24 = smov (!%p3110_p12), 124  }
  0x6a   : > { %681 = sbr.rel (%p3110_p12) target bundleno = 479 (0x1df), region = 112  ;;  %s3722_s1 = smov (!%p3110_p12), 116  }
  0x6c   : > { %s677_s23 = scalar_lea.vmem %s4387_s29, %s3167_s16 }
  0x6d   : > { %s3987_s8 = scalar_lea.vmem %s4388_s4, %s3107_s27 }
  0x6f   : > { %v685_v0 = vld [vmem:[#allocation4 + $0x8] sm:$0xff]  ;;  %v684_v1 = vld [vmem:[#allocation4] sm:$0xff]  ;;  %vm693_vm0 = vcmask 130048   ;;  %v776_v3 = vld [vmem:[#allocation7 + $0x8] sm:$0xff]  ;;  %v3723_v16 = vmov 1983009808   ;;  %v884_v18 = vlaneseq }
  0x70   : > { %v682_v2 = vld [vmem:[%s677_s23] sm:$0xff]  ;;  %3223 = vmatprep.subr.mxu0 %v685_v0  ;;  %v775_v4 = vld [vmem:[#allocation7] sm:$0xff]  ;;  %v683_v5 = vld [vmem:[%s677_s23 + $0x8] sm:$0xff]  ;;  %3230 = vmatprep.subr.mxu1 %v776_v3  ;;  %v882_v17 = vunpack.c.l.s4 %v3723_v16  ;;  %v3724_v19 = vmov 1934713408   ;;  %vm1443_vm1 = vcmask 31744  }
  0x71   : > { %3227 = vmatprep.mubr.msk.f32.mxu0 %vm693_vm0, %v682_v2  ;;  %3224 = vmatpush3.msra.mxu0 %v685_v0  ;;  %v3111_v6 = vld [vmem:[%s4335_s6] ss:$0 sm:$0xff]  ;;  %v914_v20 = vunpack.c.l.s4 %v3724_v19  ;;  %v885_v22 = vshrl.u32 %v884_v18, 7 }
  0x72   : > { %3225 = vmatprep.subr.mxu0 %v684_v1  ;;  %3231 = vmatpush3.msra.mxu1 %v776_v3  ;;  %v3114_v10 = vld [vmem:[%s4336_s7] ss:$0 sm:$0xff]  ;;  %v883_v21 = vunpack.c.0.s8 %v882_v17 }
  0x73   : > { %3226 = vmatpush3.msra.mxu0 %v684_v1  ;;  %3232 = vmatprep.subr.mxu1 %v775_v4  ;;  %v915_v25 = vunpack.c.0.s8 %v914_v20 }
  0x74   : > { %3228 = vmatmul.mubr.msk.f32.vlgmr.msra.gmra.mxu0 %vm693_vm0, %v683_v5  ;;  %3233 = vmatpush3.msra.mxu1 %v775_v4  ;;  %v4012_v26 = vsub.s32 %v883_v21, %v885_v22 }
  0x75   : > { %3234 = vmatprep.mubr.msk.f32.mxu1 %vm693_vm0, %v682_v2  ;;  %v4014_v33 = vsub.s32 %v915_v25, %v885_v22 }
  0x76   : > { %3235 = vmatmul.mubr.msk.f32.vlgmr.msra.gmra.mxu1 %vm693_vm0, %v683_v5 }
 0x134   : > { %v3229_v7 = vpop.f32.mrf.mxu0 }
 0x135   : > { %v772_v8 = vadd.f32 %v3229_v7, %v3111_v6 }
 0x136   : > { %v766_v9 = vpop.f32.mrf.mxu0  ;;  %v3236_v12 = vpop.f32.mrf.mxu1 }
 0x137   : > { %869 = vrot.lane.b32.xlu1 %v772_v8, %s3720_s21  ;;  %863 = vrot.lane.b32.xlu0 %v772_v8, %s3721_s24  ;;  %v3997_v11 = vadd.f32 %v3111_v6, %v766_v9  ;;  %v3999_v13 = vadd.f32 %v3236_v12, %v3114_v10 }
 0x138   : > { %v850_v14 = vpop.f32.mrf.mxu1 }
 0x139   : > { %v4004_v15 = vadd.f32 %v3114_v10, %v850_v14 }
 0x13b   : > { %875 = vrot.lane.b32.xlu1 %v772_v8, %s3722_s1  ;;  %861 = vrot.lane.b32.xlu0 %v3997_v11, %s3721_s24 }
 0x13f   : > { %1155 = vrot.lane.b32.xlu1 %v3999_v13, %s3721_s24  ;;  %873 = vrot.lane.b32.xlu0 %v3997_v11, %s3722_s1 }
 0x143   : > { %1161 = vrot.lane.b32.xlu1 %v3999_v13, %s3720_s21  ;;  %1153 = vrot.lane.b32.xlu0 %v4004_v15, %s3721_s24 }
 0x147   : > { %867 = vrot.lane.b32.xlu1 %v3997_v11, %s3720_s21  ;;  %1159 = vrot.lane.b32.xlu0 %v4004_v15, %s3720_s21 }
 0x14b   : > { %1167 = vrot.lane.b32.xlu1 %v3999_v13, %s3722_s1  ;;  %1165 = vrot.lane.b32.xlu0 %v4004_v15, %s3722_s1 }
 0x1a9   : > { %v870_v23 = vpop.permute.xlu1 %869  ;;  %v864_v24 = vpop.permute.xlu0 %863 }
 0x1aa   : > { %v947_v27 = vcombine.low %v772_v8, %v870_v23  ;;  %v948_v28 = vcombine.high %v772_v8, %v870_v23 }
 0x1ac   : > { %v955_v34 = vrot.slane %v947_v27, %v4012_v26  ;;  %v962_v35 = vrot.slane %v948_v28, %v4012_v26 }
 0x1ad   : > { %v876_v29 = vpop.permute.xlu1 %875  ;;  %v862_v30 = vpop.permute.xlu0 %861 }
 0x1ae   : > { %v963_v31 = vcombine.low %v864_v24, %v876_v29  ;;  %v964_v32 = vcombine.high %v864_v24, %v876_v29 }
 0x1b0   : > { %v971_v36 = vrot.slane %v963_v31, %v4012_v26  ;;  %v978_v37 = vrot.slane %v964_v32, %v4012_v26 }
 0x1b1   : > { %v4020_v38 = vpop.permute.xlu1 %1155  ;;  %v874_v39 = vpop.permute.xlu0 %873 }
 0x1b2   : > { %v979_v40 = vcombine.low %v955_v34, %v971_v36  ;;  %v980_v41 = vcombine.high %v955_v34, %v971_v36  ;;  %v995_v42 = vcombine.low %v962_v35, %v978_v37  ;;  %v996_v43 = vcombine.high %v962_v35, %v978_v37 }
 0x1b3   : > { %v895_v48 = vcombine.low %v862_v30, %v874_v39  ;;  %v896_v49 = vcombine.high %v862_v30, %v874_v39 }
 0x1b4   : > { %v987_v44 = vrot.slane %v979_v40, %v4014_v33  ;;  %v994_v45 = vrot.slane %v980_v41, %v4014_v33  ;;  %v1003_v46 = vrot.slane %v995_v42, %v4014_v33  ;;  %v1010_v47 = vrot.slane %v996_v43, %v4014_v33 }
 0x1b5   : > { %v1162_v50 = vpop.permute.xlu1 %1161  ;;  %v1154_v51 = vpop.permute.xlu0 %1153  ;;  %v903_v62 = vrot.slane %v895_v48, %v4012_v26  ;;  %v910_v63 = vrot.slane %v896_v49, %v4012_v26 }
 0x1b6   : > { %v1083_v52 = vcombine.low %v987_v44, %v994_v45  ;;  %v3119_v53 = vcombine.high %v987_v44, %v994_v45  ;;  %v1099_v54 = vcombine.low %v1003_v46, %v1010_v47  ;;  %v3120_v55 = vcombine.high %v1003_v46, %v1010_v47 }
 0x1b7   : > { %v1239_v56 = vcombine.low %v3999_v13, %v1162_v50  ;;  %v1240_v57 = vcombine.high %v3999_v13, %v1162_v50 }
 0x1b8   : > { %v1090_v58 = vrot.slane %v1083_v52, %v4012_v26  ;;  %v1098_v59 = vrot.slane %v3119_v53, %v4012_v26  ;;  %v1106_v60 = vrot.slane %v1099_v54, %v4012_v26  ;;  %v1114_v61 = vrot.slane %v3120_v55, %v4012_v26 }
 0x1b9   : > { %v1247_v0 = vrot.slane %v1239_v56, %v4012_v26  ;;  %v1254_v1 = vrot.slane %v1240_v57, %v4012_v26  ;;  %v868_v2 = vpop.permute.xlu1 %867  ;;  %v1160_v3 = vpop.permute.xlu0 %1159 }
 0x1ba   : > { %v1115_v4 = vcombine.low %v1090_v58, %v1098_v59  ;;  %v1116_v5 = vcombine.high %v1090_v58, %v1098_v59  ;;  %v1131_v6 = vcombine.low %v1106_v60, %v1114_v61  ;;  %v1132_v7 = vcombine.high %v1106_v60, %v1114_v61 }
 0x1bb   : > { %v879_v8 = vcombine.low %v3997_v11, %v868_v2  ;;  %v880_v9 = vcombine.high %v3997_v11, %v868_v2  ;;  %v1171_v10 = vcombine.low %v4004_v15, %v1160_v3  ;;  %v1172_v12 = vcombine.high %v4004_v15, %v1160_v3 }
 0x1bc   : > { %v1123_v13 = vrot.slane %v1115_v4, %v4014_v33  ;;  %v1130_v14 = vrot.slane %v1116_v5, %v4014_v33  ;;  %v1139_v16 = vrot.slane %v1131_v6, %v4014_v33  ;;  %v1146_v17 = vrot.slane %v1132_v7, %v4014_v33 }
 0x1bd   : > { %v887_v18 = vrot.slane %v879_v8, %v4012_v26  ;;  %v894_v19 = vrot.slane %v880_v9, %v4012_v26  ;;  %v4047_v20 = vrot.slane %v1171_v10, %v4012_v26  ;;  %v4050_v11 = vrot.slane %v1172_v12, %v4012_v26  ;;  %v1168_v21 = vpop.permute.xlu1 %1167  ;;  %v1166_v15 = vpop.permute.xlu0 %1165 }
 0x1be   : > { %v1147_v22 = vcombine.low %v1123_v13, %v1139_v16  ;;  %v1148_v23 = vcombine.high %v1123_v13, %v1139_v16  ;;  %v1149_v24 = vcombine.low %v1130_v14, %v1146_v17  ;;  %v1150_v25 = vcombine.high %v1130_v14, %v1146_v17 }
 0x1bf   : > { %v911_v27 = vcombine.low %v887_v18, %v903_v62  ;;  %v912_v28 = vcombine.high %v887_v18, %v903_v62  ;;  %v927_v29 = vcombine.low %v894_v19, %v910_v63  ;;  %v928_v30 = vcombine.high %v894_v19, %v910_v63 }
 0x1c0   : > { %1445 = vst.msk [vmem:[#allocation2 + $0x8] sm:$0xff] %vm1443_vm1, %v1147_v22  ;;  %1447 = vst.msk [vmem:[#allocation2 + $0x18] sm:$0xff] %vm1443_vm1, %v1148_v23  ;;  %v1255_v31 = vcombine.low %v4020_v38, %v1168_v21  ;;  %v1256_v32 = vcombine.high %v4020_v38, %v1168_v21  ;;  %v1187_v34 = vcombine.low %v1154_v51, %v1166_v15 }
 0x1c1   : > { %1449 = vst.msk [vmem:[#allocation2 + $0x28] sm:$0xff] %vm1443_vm1, %v1149_v24  ;;  %1451 = vst.msk [vmem:[#allocation2 + $0x38] sm:$0xff] %vm1443_vm1, %v1150_v25  ;;  %v1188_v35 = vcombine.high %v1154_v51, %v1166_v15  ;;  %v919_v36 = vrot.slane %v911_v27, %v4014_v33  ;;  %v926_v37 = vrot.slane %v912_v28, %v4014_v33 }
 0x1c2   : > { %v935_v39 = vrot.slane %v927_v29, %v4014_v33  ;;  %v942_v40 = vrot.slane %v928_v30, %v4014_v33  ;;  %v1263_v41 = vrot.slane %v1255_v31, %v4012_v26  ;;  %v1270_v42 = vrot.slane %v1256_v32, %v4012_v26 }
 0x1c3   : > { %v1195_v43 = vrot.slane %v1187_v34, %v4012_v26  ;;  %v1202_v44 = vrot.slane %v1188_v35, %v4012_v26  ;;  %v1015_v45 = vcombine.low %v919_v36, %v926_v37  ;;  %v3117_v38 = vcombine.high %v919_v36, %v926_v37 }
 0x1c4   : > { %v1031_v46 = vcombine.low %v935_v39, %v942_v40  ;;  %v3118_v47 = vcombine.high %v935_v39, %v942_v40  ;;  %v1271_v48 = vcombine.low %v1247_v0, %v1263_v41  ;;  %v1272_v49 = vcombine.high %v1247_v0, %v1263_v41 }
 0x1c5   : > { %v1287_v50 = vcombine.low %v1254_v1, %v1270_v42  ;;  %v1288_v51 = vcombine.high %v1254_v1, %v1270_v42  ;;  %v1022_v52 = vrot.slane %v1015_v45, %v4012_v26  ;;  %v1030_v53 = vrot.slane %v3117_v38, %v4012_v26 }
 0x1c6   : > { %v1038_v54 = vrot.slane %v1031_v46, %v4012_v26  ;;  %v1046_v55 = vrot.slane %v3118_v47, %v4012_v26  ;;  %v1279_v56 = vrot.slane %v1271_v48, %v4014_v33  ;;  %v1286_v57 = vrot.slane %v1272_v49, %v4014_v33 }
 0x1c7   : > { %v1295_v58 = vrot.slane %v1287_v50, %v4014_v33  ;;  %v1302_v59 = vrot.slane %v1288_v51, %v4014_v33  ;;  %v1047_v60 = vcombine.low %v1022_v52, %v1030_v53  ;;  %v1048_v61 = vcombine.high %v1022_v52, %v1030_v53 }
 0x1c8   : > { %v1063_v62 = vcombine.low %v1038_v54, %v1046_v55  ;;  %v1064_v63 = vcombine.high %v1038_v54, %v1046_v55  ;;  %v1375_v0 = vcombine.low %v1279_v56, %v1286_v57  ;;  %v3123_v1 = vcombine.high %v1279_v56, %v1286_v57 }
 0x1c9   : > { %v1391_v2 = vcombine.low %v1295_v58, %v1302_v59  ;;  %v3124_v3 = vcombine.high %v1295_v58, %v1302_v59  ;;  %v1055_v4 = vrot.slane %v1047_v60, %v4014_v33  ;;  %v1062_v5 = vrot.slane %v1048_v61, %v4014_v33 }
 0x1ca   : > { %v1071_v6 = vrot.slane %v1063_v62, %v4014_v33  ;;  %v1078_v7 = vrot.slane %v1064_v63, %v4014_v33  ;;  %v1382_v8 = vrot.slane %v1375_v0, %v4012_v26  ;;  %v1390_v9 = vrot.slane %v3123_v1, %v4012_v26 }
 0x1cb   : > { %v1398_v10 = vrot.slane %v1391_v2, %v4012_v26  ;;  %v1406_v12 = vrot.slane %v3124_v3, %v4012_v26  ;;  %v1203_v22 = vcombine.low %v4047_v20, %v1195_v43  ;;  %v1204_v23 = vcombine.high %v4047_v20, %v1195_v43 }
 0x1cc   : > { %v1079_v13 = vcombine.low %v1055_v4, %v1071_v6  ;;  %v1080_v14 = vcombine.high %v1055_v4, %v1071_v6  ;;  %v1081_v16 = vcombine.low %v1062_v5, %v1078_v7  ;;  %v1082_v17 = vcombine.high %v1062_v5, %v1078_v7 }
 0x1cd   : > { %v1407_v18 = vcombine.low %v1382_v8, %v1390_v9  ;;  %v1408_v19 = vcombine.high %v1382_v8, %v1390_v9  ;;  %v1423_v21 = vcombine.low %v1398_v10, %v1406_v12  ;;  %v1424_v15 = vcombine.high %v1398_v10, %v1406_v12 }
 0x1ce   : > { %1444 = vst.msk [vmem:[#allocation2] sm:$0xff] %vm1443_vm1, %v1079_v13  ;;  %1446 = vst.msk [vmem:[#allocation2 + $0x10] sm:$0xff] %vm1443_vm1, %v1080_v14  ;;  %v1219_v24 = vcombine.low %v4050_v11, %v1202_v44  ;;  %v1220_v25 = vcombine.high %v4050_v11, %v1202_v44  ;;  %v1211_v31 = vrot.slane %v1203_v22, %v4014_v33 }
 0x1cf   : > { %1448 = vst.msk [vmem:[#allocation2 + $0x20] sm:$0xff] %vm1443_vm1, %v1081_v16  ;;  %1450 = vst.msk [vmem:[#allocation2 + $0x30] sm:$0xff] %vm1443_vm1, %v1082_v17  ;;  %v1415_v27 = vrot.slane %v1407_v18, %v4014_v33  ;;  %v1422_v28 = vrot.slane %v1408_v19, %v4014_v33  ;;  %v1431_v29 = vrot.slane %v1423_v21, %v4014_v33 }
 0x1d0   : > { %v1438_v30 = vrot.slane %v1424_v15, %v4014_v33  ;;  %v1218_v32 = vrot.slane %v1204_v23, %v4014_v33  ;;  %v1227_v34 = vrot.slane %v1219_v24, %v4014_v33  ;;  %v1234_v20 = vrot.slane %v1220_v25, %v4014_v33 }
 0x1d1   : > { %v1439_v35 = vcombine.low %v1415_v27, %v1431_v29  ;;  %v1440_v36 = vcombine.high %v1415_v27, %v1431_v29 }
 0x1d2   : > { %v1441_v37 = vcombine.low %v1422_v28, %v1438_v30  ;;  %v1442_v11 = vcombine.high %v1422_v28, %v1438_v30  ;;  %v1307_v39 = vcombine.low %v1211_v31, %v1218_v32  ;;  %v3121_v40 = vcombine.high %v1211_v31, %v1218_v32 }
 0x1d3   : > { %v1323_v41 = vcombine.low %v1227_v34, %v1234_v20  ;;  %v3122_v42 = vcombine.high %v1227_v34, %v1234_v20  ;;  %1453 = vst.msk [vmem:[#allocation3 + $0x8] sm:$0xff] %vm1443_vm1, %v1439_v35  ;;  %1455 = vst.msk [vmem:[#allocation3 + $0x18] sm:$0xff] %vm1443_vm1, %v1440_v36 }
 0x1d4   : > { %1457 = vst.msk [vmem:[#allocation3 + $0x28] sm:$0xff] %vm1443_vm1, %v1441_v37  ;;  %1459 = vst.msk [vmem:[#allocation3 + $0x38] sm:$0xff] %vm1443_vm1, %v1442_v11  ;;  %v1314_v43 = vrot.slane %v1307_v39, %v4012_v26  ;;  %v1322_v44 = vrot.slane %v3121_v40, %v4012_v26 }
 0x1d5   : > { %v1330_v45 = vrot.slane %v1323_v41, %v4012_v26  ;;  %v1338_v38 = vrot.slane %v3122_v42, %v4012_v26 }
 0x1d6   : > { %v1339_v46 = vcombine.low %v1314_v43, %v1322_v44  ;;  %v1340_v47 = vcombine.high %v1314_v43, %v1322_v44 }
 0x1d7   : > { %v1355_v48 = vcombine.low %v1330_v45, %v1338_v38  ;;  %v1356_v49 = vcombine.high %v1330_v45, %v1338_v38 }
 0x1d8   : > { %v1347_v50 = vrot.slane %v1339_v46, %v4014_v33  ;;  %v1354_v51 = vrot.slane %v1340_v47, %v4014_v33 }
 0x1d9   : > { %v1363_v52 = vrot.slane %v1355_v48, %v4014_v33  ;;  %v1370_v53 = vrot.slane %v1356_v49, %v4014_v33 }
 0x1db   : > { %v1371_v54 = vcombine.low %v1347_v50, %v1363_v52  ;;  %v1372_v55 = vcombine.high %v1347_v50, %v1363_v52  ;;  %v1373_v56 = vcombine.low %v1354_v51, %v1370_v53  ;;  %v1374_v57 = vcombine.high %v1354_v51, %v1370_v53 }
 0x1dd   : > { %1452 = vst.msk [vmem:[#allocation3] sm:$0xff] %vm1443_vm1, %v1371_v54  ;;  %1454 = vst.msk [vmem:[#allocation3 + $0x10] sm:$0xff] %vm1443_vm1, %v1372_v55 }
 0x1de   : > { %1456 = vst.msk [vmem:[#allocation3 + $0x20] sm:$0xff] %vm1443_vm1, %v1373_v56  ;;  %1458 = vst.msk [vmem:[#allocation3 + $0x30] sm:$0xff] %vm1443_vm1, %v1374_v57 }
 0x1df PF: > { %s4389_s29 = sld [smem:[#allocation27_spill]]  ;;  %v3725_v58 = vmov 0.0   ;;  %vm3726_vm2 = vmmov 0   ;;  %v4124_v59 = vld [vmem:[%s3987_s8] sm:$0xff]  ;;  %vm1470_vm3 = vcmask 130048   ;;  %s3727_s4 = smov 116   ;;  %v1559_v6 = vlaneseq }
 0x1e0   : > { %3237 = vmatprep.subr.mxu0 %v3725_v58  ;;  %3241 = vmatprep.mubr.msk.f32.mxu0 %vm3726_vm2, %v3725_v58  ;;  %v3125_v60 = vld [vmem:[%s4334_s5] ss:$0 sm:$0xff]  ;;  %s3728_s21 = smov 124   ;;  %v1695_v0 = vld [vmem:[#allocation2 + $0x8] sm:$0xff]  ;;  %vm1710_vm4 = vcmask 31744   ;;  %v1701_v1 = vld [vmem:[#allocation2 + $0x38] sm:$0xff] }
 0x1e1   : > { %3244 = vmatprep.subr.mxu1 %v3725_v58  ;;  %3248 = vmatprep.mubr.msk.f32.mxu1 %vm3726_vm2, %v3725_v58  ;;  %s3729_s24 = smov 120   ;;  %v1694_v2 = vld [vmem:[#allocation2] sm:$0xff]  ;;  %v1700_v3 = vld [vmem:[#allocation2 + $0x30] sm:$0xff]  ;;  %v3730_v4 = vmov 1983009808   ;;  %v1560_v10 = vshrl.u32 %v1559_v6, 7 }
 0x1e2   : > { %3245 = vmatpush3.xpose.msk.msra.mxu1 %vm1710_vm4, %v1695_v0  ;;  %v1557_v5 = vunpack.c.l.s4 %v3730_v4  ;;  %v3731_v7 = vmov 1934713408   ;;  %v1697_v54 = vld [vmem:[#allocation2 + $0x18] sm:$0xff]  ;;  %v1696_v57 = vld [vmem:[#allocation2 + $0x10] sm:$0xff]  ;;  %vm2394_vm5 = vcmask 1043456   ;;  %vm2840_vm6 = vcmask 523264  }
 0x1e3   : > { %3246 = vmatprep.subr.mxu1 %v3725_v58  ;;  %v1589_v8 = vunpack.c.l.s4 %v3731_v7  ;;  %s3163_s17 = sshll.u32 %s3698_s0, 1  ;;  %s4391_s22 = sld [smem:[#allocation32_spill]] }
 0x1e4   : > { %v1558_v9 = vunpack.c.0.s8 %v1557_v5  ;;  %s2957_s16 = sadd.s32 %s3694_s30, %s3163_s17  ;;  %s4392_s25 = sld [smem:[#allocation33_spill]] }
 0x1e5   : > { %s4390_s23 = smov %s4389_s29  ;;  %v1462_v26 = vld [vmem:[%s4389_s29 + $0x8] sm:$0xff]  ;;  %v1590_v14 = vunpack.c.0.s8 %v1589_v8  ;;  %s3164_s3 = sshll.u32 %s2957_s16, 7 }
 0x1e6   : > { %v1461_v33 = vld [vmem:[%s4390_s23] sm:$0xff]  ;;  %3238 = vmatpush3.msra.mxu0 %v1462_v26  ;;  %3247 = vmatpush3.xpose.msk.msra.mxu1 %vm1710_vm4, %v1694_v2  ;;  %v1561_v16 = vsub.s32 %v1558_v9, %v1560_v10  ;;  %s2961_s8 = sshll.u32 %s664_s12, 4  ;;  %s4393_s0 = sld [smem:[#allocation34_spill]]  ;;  %s2962_s8 = int_to_ptr.vmem [resolvable:$true] %s2961_s8 }
 0x1e7   : > { %3239 = vmatprep.subr.mxu0 %v3725_v58  ;;  %3251 = vmatprep.subr.mxu1 %v3725_v58  ;;  %v1593_v22 = vsub.s32 %v1590_v14, %v1560_v10  ;;  %v1705_v14 = vld [vmem:[#allocation3 + $0x18] sm:$0xff]  ;;  %s4395_s30 = sand.u32 1, %s3686_s28   ;;  %s3606_s1 = scalar_lea.vmem %s2962_s8, 128 }
 0x1e8   : > { %3240 = vmatpush3.msra.mxu0 %v1461_v33  ;;  %v1699_v33 = vld [vmem:[#allocation2 + $0x28] sm:$0xff]  ;;  %s2946_s17 = scalar_lea.sflag [#allocation6], %s4395_s30  ;;  %p3607_p1 = scmp.ne.s32.totalorder %s2962_s8, %s3606_s1 }
 0x1e9   : > { %3242 = vmatmul.mubr.msk.f32.vlgmr.msra.gmra.mxu0 %vm1470_vm3, %v4124_v59  ;;  %3265 = vmatprep.subr.mxu0 %v3725_v58  ;;  %s3732_s16 = smov [#allocation12]  }
 0x1ea   : > { %3269 = vmatprep.mubr.msk.f32.mxu0 %vm3726_vm2, %v3725_v58  ;;  %3266 = vmatpush3.xpose.msk.msra.mxu0 %vm1710_vm4, %v1701_v1  ;;  %p3608_p4 = pnand %p3607_p1, %p3880_p3  ;;  %s3610_s19 = sshll.u32 %s3732_s16, 4  ;;  %s3611_s19 = int_to_ptr.vmem [resolvable:$false] %s3610_s19 }
 0x1eb   : > { %3267 = vmatprep.subr.mxu0 %v3725_v58  ;;  %p3613_p7 = scmp.lt.s32.totalorder %s2962_s8, %s3611_s19 }
 0x1ec   : > { %s2959_s18 = scalar_lea.hbm %s4393_s0, %s3164_s3  ;;  %p3609_p6 = pneg %p3608_p4 }
 0x1ee   : > { %3268 = vmatpush3.xpose.msk.msra.mxu0 %vm1710_vm4, %v1700_v3 }
 0x1ef   : > { %3279 = vmatprep.subr.mxu0 %v3725_v58 }
 0x2a9   : > { %v1540_v61 = vpop.f32.mrf.mxu0 }
 0x2aa   : > { %v1541_v62 = vadd.f32 %v3125_v60, %v1540_v61  ;;  %v1698_v60 = vld [vmem:[#allocation2 + $0x20] sm:$0xff] }
 0x2ab   : > { %v3243_v63 = vpop.f32.mrf.mxu0 }
 0x2ac   : > { %1551 = vrot.lane.b32.xlu1 %v1541_v62, %s3727_s4  ;;  %1545 = vrot.lane.b32.xlu0 %v1541_v62, %s3728_s21 }
 0x2b0   : > { %1548 = vrot.lane.b32.xlu0 %v1541_v62, %s3729_s24  ;;  %s4394_s24 = smov %s4393_s0 }
 0x31e   : > { %v1552_v12 = vpop.permute.xlu1 %1551  ;;  %v1546_v13 = vpop.permute.xlu0 %1545 }
 0x31f   : > { %v1570_v17 = vcombine.low %v1546_v13, %v1552_v12  ;;  %v1571_v18 = vcombine.high %v1546_v13, %v1552_v12  ;;  %v1703_v12 = vld [vmem:[#allocation3 + $0x8] sm:$0xff]  ;;  %v1702_v13 = vld [vmem:[#allocation3] sm:$0xff] }
 0x321   : > { %v1578_v23 = vrot.slane %v1570_v17, %v1561_v16  ;;  %v1585_v24 = vrot.slane %v1571_v18, %v1561_v16 }
 0x322   : > { %v1549_v19 = vpop.permute.xlu0 %1548 }
 0x323   : > { %v1554_v21 = vcombine.low %v1541_v62, %v1549_v19  ;;  %v1555_v15 = vcombine.high %v1541_v62, %v1549_v19 }
 0x325   : > { %v1562_v25 = vrot.slane %v1554_v21, %v1561_v16  ;;  %v1569_v27 = vrot.slane %v1555_v15, %v1561_v16 }
 0x327   : > { %v1586_v28 = vcombine.low %v1562_v25, %v1578_v23  ;;  %v1587_v29 = vcombine.high %v1562_v25, %v1578_v23  ;;  %v1602_v30 = vcombine.low %v1569_v27, %v1585_v24  ;;  %v1603_v31 = vcombine.high %v1569_v27, %v1585_v24 }
 0x329   : > { %v1594_v32 = vrot.slane %v1586_v28, %v1593_v22  ;;  %v1601_v34 = vrot.slane %v1587_v29, %v1593_v22  ;;  %v1610_v20 = vrot.slane %v1602_v30, %v1593_v22  ;;  %v1617_v35 = vrot.slane %v1603_v31, %v1593_v22  ;;  %v1707_v29 = vld [vmem:[#allocation3 + $0x28] sm:$0xff] }
 0x32b   : > { %v1622_v36 = vcombine.low %v1594_v32, %v1601_v34  ;;  %v3127_v37 = vcombine.high %v1594_v32, %v1601_v34  ;;  %v1638_v11 = vcombine.low %v1610_v20, %v1617_v35  ;;  %v3128_v39 = vcombine.high %v1610_v20, %v1617_v35  ;;  %v1706_v34 = vld [vmem:[#allocation3 + $0x20] sm:$0xff]  ;;  %v1709_v20 = vld [vmem:[#allocation3 + $0x38] sm:$0xff] }
 0x32d   : > { %v1629_v40 = vrot.slane %v1622_v36, %v1561_v16  ;;  %v1637_v41 = vrot.slane %v3127_v37, %v1561_v16  ;;  %v1645_v42 = vrot.slane %v1638_v11, %v1561_v16  ;;  %v1653_v43 = vrot.slane %v3128_v39, %v1561_v16  ;;  %v1704_v16 = vld [vmem:[#allocation3 + $0x10] sm:$0xff] }
 0x32e   : > { %v1708_v37 = vld [vmem:[#allocation3 + $0x30] sm:$0xff] }
 0x32f   : > { %v1655_v44 = vcombine.high %v1629_v40, %v1637_v41  ;;  %v1671_v45 = vcombine.high %v1645_v42, %v1653_v43  ;;  %v1654_v38 = vcombine.low %v1629_v40, %v1637_v41  ;;  %v1670_v46 = vcombine.low %v1645_v42, %v1653_v43  ;;  %v2387_v42 = vld [vmem:[#allocation9] sm:$0xf]  ;;  %v2388_v43 = vld [vmem:[#allocation9 + $0x4] sm:$0xf] }
 0x331   : > { %v1662_v47 = vrot.slane %v1654_v38, %v1593_v22  ;;  %v1678_v48 = vrot.slane %v1670_v46, %v1593_v22  ;;  %v1669_v49 = vrot.slane %v1655_v44, %v1593_v22  ;;  %v1685_v50 = vrot.slane %v1671_v45, %v1593_v22 }
 0x333   : > { %v1686_v51 = vcombine.low %v1662_v47, %v1678_v48  ;;  %v1689_v52 = vcombine.high %v1669_v49, %v1685_v50  ;;  %v1687_v56 = vcombine.high %v1662_v47, %v1678_v48  ;;  %v1688_v61 = vcombine.low %v1669_v49, %v1685_v50 }
 0x335   : > { %v1690_v53 = vmul.f32 0.5, %v1686_v51  ;;  %v1693_v55 = vmul.f32 0.5, %v1689_v52  ;;  %v1691_v26 = vmul.f32 0.5, %v1687_v56  ;;  %v1692_v62 = vmul.f32 0.5, %v1688_v61 }
 0x337   : > { %3249 = vmatmul.mubr.msk.f32.vlgmr.msra.gmra.mxu1 %vm1710_vm4, %v1690_v53  ;;  %3270 = vmatmul.mubr.msk.f32.vlgmr.msra.gmra.mxu0 %vm1710_vm4, %v1693_v55 }
 0x338   : > { %3252 = vmatpush3.xpose.msk.msra.mxu1 %vm1710_vm4, %v1697_v54  ;;  %3255 = vmatprep.mubr.msk.f32.mxu1 %vm3726_vm2, %v3725_v58 }
 0x339   : > { %3253 = vmatprep.subr.mxu1 %v3725_v58  ;;  %3283 = vmatprep.mubr.msk.f32.mxu0 %vm3726_vm2, %v3725_v58 }
 0x33a   : > { %3280 = vmatpush3.msra.mxu0 %v1705_v14 }
 0x33b   : > { %3281 = vmatprep.subr.mxu0 %v3725_v58 }
 0x33c   : > { %3254 = vmatpush3.xpose.msk.msra.mxu1 %vm1710_vm4, %v1696_v57  ;;  %3282 = vmatpush3.msra.mxu0 %v1704_v16  ;;  %v2390_v16 = vld [vmem:[#allocation9 + $0xc] sm:$0xf] }
 0x33d   : > { %3258 = vmatprep.subr.mxu1 %v3725_v58  ;;  %3293 = vmatprep.subr.mxu0 %v3725_v58 }
 0x33f   : > { %3256 = vmatmul.mubr.msk.f32.vlgmr.msra.gmra.mxu1 %vm1710_vm4, %v1691_v26 }
 0x340   : > { %3259 = vmatpush3.xpose.msk.msra.mxu1 %vm1710_vm4, %v1699_v33  ;;  %3262 = vmatprep.mubr.msk.f32.mxu1 %vm3726_vm2, %v3725_v58 }
 0x341   : > { %3260 = vmatprep.subr.mxu1 %v3725_v58 }
 0x344   : > { %3261 = vmatpush3.xpose.msk.msra.mxu1 %vm1710_vm4, %v1698_v60 }
 0x345   : > { %3272 = vmatprep.subr.mxu1 %v3725_v58 }
 0x347   : > { %3263 = vmatmul.mubr.msk.f32.vlgmr.msra.gmra.mxu1 %vm1710_vm4, %v1692_v62 }
 0x348   : > { %3276 = vmatprep.mubr.msk.f32.mxu1 %vm3726_vm2, %v3725_v58  ;;  %3273 = vmatpush3.msra.mxu1 %v1703_v12 }
 0x349   : > { %3274 = vmatprep.subr.mxu1 %v3725_v58 }
 0x34a   : > { %3275 = vmatpush3.msra.mxu1 %v1702_v13 }
 0x34b   : > { %3286 = vmatprep.subr.mxu1 %v3725_v58 }
 0x3f7   : > { %v1786_v63 = vpop.f32.mrf.mxu1  ;;  %v2023_v0 = vpop.f32.mrf.mxu0 }
 0x3f8   : > { %v2027_v1 = vsel %vm1470_vm3, %v1786_v63, -inf  ;;  %v2036_v4 = vsel %vm1470_vm3, %v2023_v0, -inf }
 0x3f9   : > { %2028 = vmax.xlane.f32.xlu1 %v2027_v1  ;;  %v3250_v2 = vpop.f32.mrf.mxu1  ;;  %v3271_v3 = vpop.f32.mrf.mxu0 }
 0x3fd   : > { %2037 = vmax.xlane.f32.xlu1 %v2036_v4 }
 0x3ff   : > { %v1865_v5 = vpop.f32.mrf.mxu1 }
 0x400   : > { %v2030_v6 = vsel %vm1470_vm3, %v1865_v5, -inf }
 0x401   : > { %2031 = vmax.xlane.f32.xlu0 %v2030_v6  ;;  %v3257_v7 = vpop.f32.mrf.mxu1 }
 0x407   : > { %v1944_v8 = vpop.f32.mrf.mxu1 }
 0x408   : > { %v2033_v9 = vsel %vm1470_vm3, %v1944_v8, -inf }
 0x409   : > { %2034 = vmax.xlane.f32.xlu0 %v2033_v9  ;;  %v3264_v10 = vpop.f32.mrf.mxu1 }
 0x482   : > { %v2029_v17 = vpop.xlane.xlu1 %2028 }
 0x483   : > { %v2051_v18 = vsub.f32 %v1786_v63, %v2029_v17  ;;  %v2039_v44 = vsub.f32 -inf, %v2029_v17 }
 0x485   : > { %v2055_v19 = vmul.f32 1.442695, %v2051_v18  ;;  %v2043_v45 = vmul.f32 1.442695, %v2039_v44 }
 0x486   : > { %v2038_v21 = vpop.xlane.xlu1 %2037 }
 0x487   : > { %3474 = vpow2.f32 %v2055_v19  ;;  %v2054_v15 = vsub.f32 %v2023_v0, %v2038_v21  ;;  %v2042_v46 = vsub.f32 -inf, %v2038_v21 }
 0x489   : > { %v2061_v25 = vmul.f32 1.442695, %v2054_v15  ;;  %v2049_v48 = vmul.f32 1.442695, %v2042_v46 }
 0x48a   : > { %v2032_v22 = vpop.xlane.xlu0 %2031 }
 0x48b   : > { %v2052_v23 = vsub.f32 %v1865_v5, %v2032_v22  ;;  %v2040_v38 = vsub.f32 -inf, %v2032_v22 }
 0x48d   : > { %v2057_v24 = vmul.f32 1.442695, %v2052_v23  ;;  %v2045_v47 = vmul.f32 1.442695, %v2040_v38 }
 0x48f   : > { %3476 = vpow2.f32 %v2057_v24 }
 0x490   : > { %3478 = vpow2.f32 %v2061_v25 }
 0x492   : > { %v2035_v27 = vpop.xlane.xlu0 %2034 }
 0x493   : > { %v2053_v28 = vsub.f32 %v1944_v8, %v2035_v27  ;;  %v2041_v49 = vsub.f32 -inf, %v2035_v27  ;;  %v2389_v8 = vld [vmem:[#allocation9 + $0x8] sm:$0xf] }
 0x494   : > { %v3475_v30 = vpop.eup %3474 }
 0x495   : > { %v2059_v31 = vmul.f32 1.442695, %v2053_v28  ;;  %3277 = vmatmul.mubr.msk.f32.vlgmr.msra.gmra.mxu1 %vm1470_vm3, %v3475_v30  ;;  %v2067_v32 = vsel %vm1470_vm3, %v3475_v30, 0.0  ;;  %v2047_v50 = vmul.f32 1.442695, %v2041_v49 }
 0x496   : > { %2068 = vadd.xlane.f32.xlu0 %v2067_v32  ;;  %3287 = vmatpush3.msra.mxu1 %v1707_v29 }
 0x497   : > { %3480 = vpow2.f32 %v2059_v31  ;;  %3288 = vmatprep.subr.mxu1 %v3725_v58  ;;  %3290 = vmatprep.mubr.msk.f32.mxu1 %vm3726_vm2, %v3725_v58 }
 0x498   : > { %3289 = vmatpush3.msra.mxu1 %v1706_v34  ;;  %3482 = vpow2.f32 %v2043_v45 }
 0x499   : > { %3300 = vmatprep.subr.mxu1 %v3725_v58  ;;  %3484 = vpow2.f32 %v2045_v47 }
 0x49a   : > { %3486 = vpow2.f32 %v2049_v48 }
 0x49b   : > { %3488 = vpow2.f32 %v2047_v50 }
 0x49c   : > { %v3477_v35 = vpop.eup %3476 }
 0x49d   : > { %3284 = vmatmul.mubr.msk.f32.vlgmr.msra.gmra.mxu0 %vm1470_vm3, %v3477_v35  ;;  %v2070_v36 = vsel %vm1470_vm3, %v3477_v35, 0.0  ;;  %v3479_v11 = vpop.eup %3478 }
 0x49e   : > { %3294 = vmatpush3.msra.mxu0 %v1709_v20  ;;  %2071 = vadd.xlane.f32.xlu1 %v2070_v36  ;;  %v2076_v39 = vsel %vm1470_vm3, %v3479_v11, 0.0 }
 0x49f   : > { %3295 = vmatprep.subr.mxu0 %v3725_v58  ;;  %3297 = vmatprep.mubr.msk.f32.mxu0 %vm3726_vm2, %v3725_v58 }
 0x4a0   : > { %3296 = vmatpush3.msra.mxu0 %v1708_v37 }
 0x4a1   : > { %3298 = vmatmul.mubr.msk.f32.vlgmr.msra.gmra.mxu0 %vm1470_vm3, %v3479_v11  ;;  %3305 = vmatprep.subr.mxu0 %v3725_v58 }
 0x4a2   : > { %2077 = vadd.xlane.f32.xlu1 %v2076_v39  ;;  %3307 = vmatprep.mubr.msk.f32.mxu0 %vm3726_vm2, %v3725_v58 }
 0x4a3   : > { %3306 = vmatpush3.msk.msra.mxu0 %vm2394_vm5, %v2388_v43 }
 0x4a4   : > { %v3481_v40 = vpop.eup %3480  ;;  %3315 = vmatprep.subr.mxu0 %v3725_v58 }
 0x4a5   : > { %3291 = vmatmul.mubr.msk.f32.vlgmr.msra.gmra.mxu1 %vm1470_vm3, %v3481_v40  ;;  %v2073_v41 = vsel %vm1470_vm3, %v3481_v40, 0.0  ;;  %v3483_v51 = vpop.eup %3482 }
 0x4a6   : > { %2074 = vadd.xlane.f32.xlu0 %v2073_v41  ;;  %3302 = vmatprep.mubr.msk.f32.mxu1 %vm3726_vm2, %v3725_v58  ;;  %v2063_v53 = vmul.f32 0.0, %v3483_v51  ;;  %v3485_v55 = vpop.eup %3484  ;;  %v2743_v51 = vld [vmem:[#allocation10 + $0x8] sm:$0xff] }
 0x4a7   : > { %3301 = vmatpush3.msk.msra.mxu1 %vm2394_vm5, %v2387_v42  ;;  %v2064_v57 = vmul.f32 0.0, %v3485_v55  ;;  %v3487_v26 = vpop.eup %3486  ;;  %v3153_v42 = vld [vmem:[%s4338_s9] ss:$0 sm:$0xff] }
 0x4a8   : > { %3310 = vmatprep.subr.mxu1 %v3725_v58  ;;  %v2066_v61 = vmul.f32 0.0, %v3487_v26  ;;  %v3489_v62 = vpop.eup %3488  ;;  %v2829_v55 = vld [vmem:[%s4343_s14 + $0x20] sm:$0xff] }
 0x4a9   : > { %v2065_v1 = vmul.f32 0.0, %v3489_v62 }
 0x51f   : > { %v2069_v52 = vpop.xlane.xlu0 %2068 }
 0x520   : > { %v2079_v54 = vadd.f32 %v2069_v52, %v2063_v53  ;;  %v2742_v52 = vld [vmem:[#allocation10] sm:$0xff] }
 0x522   : > { %3490 = vrcp.f32 %v2079_v54  ;;  %v2830_v54 = vld [vmem:[%s4343_s14 + $0x28] sm:$0xff] }
 0x527   : > { %v2072_v56 = vpop.xlane.xlu1 %2071 }
 0x528   : > { %v2080_v33 = vadd.f32 %v2072_v56, %v2064_v57  ;;  %v2828_v56 = vld [vmem:[%s4343_s14 + $0x18] sm:$0xff] }
 0x52a   : > { %3492 = vrcp.f32 %v2080_v33 }
 0x52b   : > { %v2078_v60 = vpop.xlane.xlu1 %2077 }
 0x52c   : > { %v2082_v63 = vadd.f32 %v2078_v60, %v2066_v61 }
 0x52e   : > { %3494 = vrcp.f32 %v2082_v63  ;;  %v3155_v63 = vld [vmem:[%s4340_s11] ss:$0 sm:$0xff] }
 0x52f   : > { %v2075_v0 = vpop.xlane.xlu0 %2074  ;;  %v3491_v5 = vpop.eup %3490 }
 0x530   : > { %v2081_v3 = vadd.f32 %v2075_v0, %v2065_v1 }
 0x532   : > { %3496 = vrcp.f32 %v2081_v3  ;;  %v2826_v3 = vld [vmem:[%s4343_s14 + $0x8] sm:$0xff] }
 0x537   : > { %v3493_v12 = vpop.eup %3492 }
 0x53b   : > { %v3495_v19 = vpop.eup %3494 }
 0x53f   : > { %v3497_v24 = vpop.eup %3496 }
 0x555   : > { %v2152_v2 = vpop.f32.mrf.mxu1 }
 0x556   : > { %v2375_v4 = vadd.f32 %v2152_v2, %v2063_v53  ;;  %v2831_v53 = vld [vmem:[%s4343_s14 + $0x30] sm:$0xff] }
 0x557   : > { %v3278_v6 = vpop.f32.mrf.mxu1  ;;  %v2827_v2 = vld [vmem:[%s4343_s14 + $0x10] sm:$0xff] }
 0x558   : > { %v2383_v7 = vmul.f32 %v3491_v5, %v2375_v4  ;;  %v2825_v4 = vld [vmem:[%s4343_s14] sm:$0xff] }
 0x559   : > { %v3156_v5 = vld [vmem:[%s4342_s13] ss:$0 sm:$0xff] }
 0x55a   : > { %3303 = vmatmul.mubr.msk.f32.vlgmr.msra.gmra.mxu1 %vm1710_vm4, %v2383_v7 }
 0x55b   : > { %3311 = vmatpush3.msk.msra.mxu1 %vm2394_vm5, %v2389_v8  ;;  %3312 = vmatprep.mubr.msk.f32.mxu1 %vm3726_vm2, %v3725_v58 }
 0x55c   : > { %3320 = vmatprep.subr.mxu1 %v3725_v58 }
 0x55d   : > { %v2225_v9 = vpop.f32.mrf.mxu0 }
 0x55e   : > { %v2376_v10 = vadd.f32 %v2225_v9, %v2064_v57 }
 0x55f   : > { %v3285_v13 = vpop.f32.mrf.mxu0 }
 0x560   : > { %v2384_v14 = vmul.f32 %v3493_v12, %v2376_v10  ;;  %v3158_v10 = vld [vmem:[%s4344_s15] ss:$0 sm:$0xff] }
 0x561   : > { %v2371_v17 = vpop.f32.mrf.mxu0 }
 0x562   : > { %v2378_v18 = vadd.f32 %v2371_v17, %v2066_v61  ;;  %3308 = vmatmul.mubr.msk.f32.vlgmr.msra.gmra.mxu0 %vm1710_vm4, %v2384_v14  ;;  %v3154_v61 = vld [vmem:[%s4339_s10] ss:$0 sm:$0xff] }
 0x563   : > { %v3299_v21 = vpop.f32.mrf.mxu0  ;;  %3316 = vmatpush3.msk.msra.mxu0 %vm2394_vm5, %v2390_v16  ;;  %3317 = vmatprep.mubr.msk.f32.mxu0 %vm3726_vm2, %v3725_v58 }
 0x564   : > { %v2386_v15 = vmul.f32 %v3495_v19, %v2378_v18  ;;  %3327 = vmatprep.subr.mxu0 %v3725_v58 }
 0x565   : > { %v2298_v22 = vpop.f32.mrf.mxu1 }
 0x566   : > { %v2377_v23 = vadd.f32 %v2298_v22, %v2065_v1  ;;  %3318 = vmatmul.mubr.msk.f32.vlgmr.msra.gmra.mxu0 %vm1710_vm4, %v2386_v15 }
 0x567   : > { %v3292_v25 = vpop.f32.mrf.mxu1  ;;  %3343 = vmatprep.mubr.msk.f32.mxu0 %vm3726_vm2, %v3725_v58 }
 0x568   : > { %v2385_v27 = vmul.f32 %v3497_v24, %v2377_v23 }
 0x56a   : > { %3313 = vmatmul.mubr.msk.f32.vlgmr.msra.gmra.mxu1 %vm1710_vm4, %v2385_v27  ;;  %v3160_v27 = vld [vmem:[%s4391_s22] ss:$0 sm:$0xff]  ;;  %s3612_s22 = scalar_lea.vmem %s3611_s19, 256 }
 0x56b   : > { %3324 = vmatprep.mubr.msk.f32.mxu1 %vm3726_vm2, %v3725_v58  ;;  %3321 = vmatpush3.msra.mxu1 %v2743_v51  ;;  %p3614_p9 = scmp.lt.s32.totalorder %s3612_s22, %s3606_s1 }
 0x56c   : > { %3322 = vmatprep.subr.mxu1 %v3725_v58 }
 0x56d   : > { %3323 = vmatpush3.msra.mxu1 %v2742_v52  ;;  %p3615_p8 = por %p3614_p9, %p3613_p7 }
 0x56f   : > { %p3616_p11 = pnand %p3615_p8, %p3609_p6 }
 0x61a   : > { %v2464_v28 = vpop.f32.mrf.mxu1 }
 0x61b   : > { %v2696_v35 = vsel %vm1470_vm3, %v2464_v28, 0.0 }
 0x61c   : > { %v3304_v29 = vpop.f32.mrf.mxu1 }
 0x61d   : > { %v3161_v29 = vld [vmem:[%s4392_s25] ss:$0 sm:$0xff] }
 0x622   : > { %v2540_v30 = vpop.f32.mrf.mxu0 }
 0x623   : > { %v2697_v34 = vsel %vm1470_vm3, %v2540_v30, 0.0 }
 0x624   : > { %v3309_v31 = vpop.f32.mrf.mxu0  ;;  %v2698_v36 = vadd.f32 %v2697_v34, %v2696_v35 }
 0x626   : > { %v2692_v32 = vpop.f32.mrf.mxu0 }
 0x627   : > { %v2701_v41 = vsel %vm1470_vm3, %v2692_v32, 0.0 }
 0x628   : > { %v3319_v20 = vpop.f32.mrf.mxu0 }
 0x62a   : > { %v2616_v37 = vpop.f32.mrf.mxu1 }
 0x62b   : > { %v2699_v11 = vsel %vm1470_vm3, %v2616_v37, 0.0 }
 0x62c   : > { %v2700_v39 = vadd.f32 %v2699_v11, %v2698_v36  ;;  %v3314_v40 = vpop.f32.mrf.mxu1 }
 0x62e   : > { %v2702_v43 = vadd.f32 %v2701_v41, %v2700_v39 }
 0x630   : > { %v2710_v44 = vadd.f32 %v3153_v42, %v2702_v43 }
 0x632   : > { %v2711_v45 = vadd.f32 %v2710_v44, %v4124_v59  ;;  %v2832_v59 = vld [vmem:[%s4343_s14 + $0x38] sm:$0xff] }
 0x633   : > { %3328 = vmatpush3.msra.mxu0 %v2832_v59 }
 0x634   : > { %v2714_v38 = vsel %vm1470_vm3, %v2711_v45, 0.0  ;;  %3329 = vmatprep.subr.mxu0 %v3725_v58 }
 0x635   : > { %2715 = vadd.xlane.f32.xlu0 %v2714_v38  ;;  %3330 = vmatpush3.msra.mxu0 %v2831_v53 }
 0x636   : > { %3331 = vmatprep.subr.mxu0 %v3725_v58 }
 0x637   : > { %3332 = vmatpush3.msra.mxu0 %v2830_v54 }
 0x638   : > { %3333 = vmatprep.subr.mxu0 %v3725_v58 }
 0x639   : > { %3334 = vmatpush3.msra.mxu0 %v2829_v55 }
 0x63a   : > { %3335 = vmatprep.subr.mxu0 %v3725_v58 }
 0x63b   : > { %3336 = vmatpush3.msra.mxu0 %v2828_v56 }
 0x63c   : > { %3337 = vmatprep.subr.mxu0 %v3725_v58 }
 0x63d   : > { %3338 = vmatpush3.msra.mxu0 %v2827_v2 }
 0x63e   : > { %3339 = vmatprep.subr.mxu0 %v3725_v58 }
 0x63f   : > { %3340 = vmatpush3.msra.mxu0 %v2826_v3 }
 0x640   : > { %3341 = vmatprep.subr.mxu0 %v3725_v58 }
 0x641   : > { %3342 = vmatpush3.msra.mxu0 %v2825_v4 }
 0x6be   : > { %v2716_v46 = vpop.xlane.xlu0 %2715 }
 0x6bf   : > { %v2718_v47 = vmul.f32 0.0625, %v2716_v46 }
 0x6c1   : > { %v2719_v48 = vsub.f32 %v2711_v45, %v2718_v47 }
 0x6c3   : > { %v2720_v49 = vmul.f32 %v2719_v48, %v2719_v48 }
 0x6c5   : > { %v2721_v50 = vsel %vm1470_vm3, %v2720_v49, 0.0 }
 0x6c6   : > { %2722 = vadd.xlane.f32.xlu1 %v2721_v50 }
 0x74f   : > { %v2723_v57 = vpop.xlane.xlu1 %2722 }
 0x750   : > { %v2724_v26 = vmul.f32 0.0625, %v2723_v57 }
 0x752   : > { %v2725_v33 = vadd.f32 1e-05, %v2724_v26 }
 0x754   : > { %3498 = vrsqrt.f32 %v2725_v33 }
 0x761   : > { %v3499_v60 = vpop.eup %3498 }
 0x762   : > { %v2727_v62 = vmul.f32 %v3499_v60, %v2719_v48 }
 0x764   : > { %v2734_v0 = vmul.f32 %v3154_v61, %v2727_v62 }
 0x766   : > { %v2741_v1 = vadd.f32 %v3155_v63, %v2734_v0 }
 0x768   : > { %3325 = vmatmul.mubr.msk.f32.vlgmr.msra.gmra.mxu1 %vm1470_vm3, %v2741_v1 }
 0x828   : > { %v2820_v6 = vpop.f32.mrf.mxu1 }
 0x829   : > { %v2821_v7 = vadd.f32 %v3156_v5, %v2820_v6 }
 0x82a   : > { %v3326_v8 = vpop.f32.mrf.mxu1 }
 0x82b   : > { %v2824_v9 = vmax.f32 %v2821_v7, 0.0 }
 0x82d   : > { %3344 = vmatmul.mubr.msk.f32.vlgmr.msra.gmra.mxu0 %vm2840_vm6, %v2824_v9 }
 0x8ed   : > { %v2910_v58 = vpop.f32.mrf.mxu0 }
 0x8ee   : > { %v2911_v12 = vadd.f32 %v3158_v10, %v2910_v58 }
 0x8ef   : > { %v3345_v13 = vpop.f32.mrf.mxu0 }
 0x8f0   : > { %v2914_v14 = vadd.f32 %v2911_v12, %v2741_v1 }
 0x8f2   : > { %v2917_v16 = vsel %vm1470_vm3, %v2914_v14, 0.0 }
 0x8f3   : > { %2918 = vadd.xlane.f32.xlu0 %v2917_v16 }
 0x97c   : > { %v2919_v17 = vpop.xlane.xlu0 %2918 }
 0x97d   : > { %v2920_v18 = vmul.f32 0.0625, %v2919_v17 }
 0x97f   : > { %v2921_v19 = vsub.f32 %v2914_v14, %v2920_v18 }
 0x981   : > { %v2922_v21 = vmul.f32 %v2921_v19, %v2921_v19 }
 0x983   : > { %v2923_v15 = vsel %vm1470_vm3, %v2922_v21, 0.0 }
 0x984   : > { %2924 = vadd.xlane.f32.xlu1 %v2923_v15 }
 0xa0d   : > { %v2925_v22 = vpop.xlane.xlu1 %2924 }
 0xa0e   : > { %v2926_v23 = vmul.f32 0.0625, %v2925_v22 }
 0xa10   : > { %v2927_v24 = vadd.f32 1e-05, %v2926_v23 }
 0xa12   : > { %3500 = vrsqrt.f32 %v2927_v24 }
 0xa1f   : > { %v3501_v25 = vpop.eup %3500 }
 0xa20   : > { %v2929_v28 = vmul.f32 %v3501_v25, %v2921_v19 }
 0xa22   : > { %v2936_v30 = vmul.f32 %v3160_v27, %v2929_v28 }
 0xa24   : > { %v2943_v31 = vadd.f32 %v3161_v29, %v2936_v30 }
 0xa26   : > { %2944 = vst.msk [vmem:[%s664_s12] sm:$0xff] %vm1470_vm3, %v2943_v31 }
 0xa27   : > { %3619 = shalt.err (!%p3616_p11)
}
 0xa28   : > { %s3620_s29 = scalar_lea.hbm %s2959_s18, 128  ;;  %s3624_s27 = scalar_lea.hbm %s4394_s24, 512 }
 0xa29   : > { %p3621_p13 = scmp.ne.s32.totalorder %s2959_s18, %s3620_s29  ;;  %p3625_p10 = scmp.lt.s32.totalorder %s2959_s18, %s4394_s24 }
 0xa2a   : > { %p3626_p0 = scmp.lt.s32.totalorder %s3624_s27, %s3620_s29 }
 0xa2b   : > { %p3622_p2 = pnand %p3621_p13, %p3880_p3 }
 0xa2c   : > { %p3627_p12 = por %p3626_p0, %p3625_p10 }
 0xa2d   : > { %p3623_p5 = pneg %p3622_p2 }
 0xa2f   : > { %p3628_p1 = pnand %p3627_p12, %p3623_p5 }
 0xa31   : > { %3631 = shalt.err (!%p3628_p1)
}
 0xa32   : > { %3362 = dma.vmem_to_hbm [thread:$0]  (%p3880_p3), %s2962_s8, 128, %s2959_s18, %s2946_s17  }
 0xa33 PF: > { %s4396_s4 = sld [smem:[#allocation17_spill]]  ;;  %p3389_p4 = scmp.ge.s32.totalorder %s3710_s20, 2 }
 0xa34   : > { %s4397_s21 = sld [smem:[#allocation23_spill]] }
 0xa39   : > { %s2973_s0 = sand.u32 1, %s4396_s4  }
 0xa3a   : > { %p4398_p6 = scmp.ne.s32.totalorder %s4397_s21, 0  ;;  %s2974_s30 = scalar_lea.sflag [#allocation6], %s2973_s0 }
 0xa3c   : > { %p3378_p7 = pnand %p3389_p4, %p4398_p6 }
 0xa3e   : > { %p3379_p9 = pneg %p3378_p7 }
 0xa40   : > { %3677 = dma.done.wait (%p3379_p9), %s2974_s30, 128  }
 0xa41   : > { %3679 = vsyncadd (%p3379_p9), %s2974_s30, 4294967168  ;;  %s34_s20 = sadd.s32 1, %s3710_s20   ;;  %s4399_s1 = sld [smem:[#allocation18_spill]] }
 0xa42   : > { %p31_p8 = scmp.ge.s32.totalorder %s34_s20, 6   ;;  %s4400_s29 = sld [smem:[#allocation24_spill]] }
 0xa43   : > { %s4401_s30 = sld [smem:[#allocation19_spill]]  ;;  %s4405_s27 = smov %s3686_s28 }
 0xa44   : > { %s4402_s0 = sld [smem:[#allocation20_spill]] }
 0xa45   : > { %s4403_s19 = sld [smem:[#allocation21_spill]] }
 0xa46   : > { %s4404_s26 = sld [smem:[#allocation22_spill]] }
 0xa47   : > { %s4406_s28 = smov %s4399_s1 }
 0xa48   :  { %33 = sbr.rel (!%p31_p8) target bundleno = 19 (0x13), region = 151 }
 0xa4c   : > { %s4407_s1 = smov %s4404_s26 }
 0xa4d   :  { %2979 = vsyncpa [#allocation5], 1 }
 0xa4e   :  { %2981 = vsyncpa [#allocation5 + $0x1], 1 }
 0xa4f   :  { %2982 = vsyncpa [#allocation8], 1 }
 0xa50   :  { %2983 = vsyncpa [#allocation11], 1 }
 0xa51   :  { %2984 = vsyncpa [#allocation6], 1 }
 0xa52   :  { %2986 = vsyncpa [#allocation6 + $0x1], 1 }

</bundles_post_ra>
